<compile_context>
chip_gen: v7x
topology: tpu7x:2x2x1
jax: 0.10.0
libtpu: 0.0.40
codegen_flags: <defaults>
</compile_context>

<pallas_src>
import jax
import jax.numpy as jnp
from jax.experimental import pallas as pl
from jax.experimental.pallas import tpu as pltpu

HIDDEN = 512
LEAKY_SLOPE = 0.01                      # nn.LeakyReLU default negative_slope
MAX_TM = 256                            # max batch-tile rows (MXU-friendly)
VMEM_LIMIT_CAP = 48 * 1024 * 1024       # leave headroom on v7x's 64 MiB VMEM


def _round_up(a, m):
    return ((a + m - 1) // m) * m


def _temporal_fc_kernel(x_ref, w1_ref, b1_ref, w2_ref, b2_ref, o_ref):
    """Fused 2-layer MLP: Linear -> LeakyReLU -> (Dropout=id) -> Linear."""
    # Cast the streamed activation tile to bf16 in-kernel (no wrapper pass).
    xb = x_ref[...].astype(jnp.bfloat16)

    # Layer 1: bf16 x bf16 MXU matmul with f32 accumulation, f32 bias add.
    h = jnp.dot(xb, w1_ref[...], preferred_element_type=jnp.float32)
    h = h + b1_ref[...]

    # LeakyReLU(0.01) in bf16 (maximum form valid for 0 <= slope <= 1).
    h = h.astype(jnp.bfloat16)
    h = jnp.maximum(h, LEAKY_SLOPE * h)

    # Dropout(0.2): identity at inference time.
    # TODO(synk): training-mode dropout needs pltpu.prng_seed/prng_random_bits
    #             plus 1/(1-p) inverted scaling.

    # Layer 2: bf16 MXU matmul with f32 accumulation, f32 bias add.
    y = jnp.dot(h, w2_ref[...], preferred_element_type=jnp.float32)
    y = y + b2_ref[...]
    o_ref[...] = y.astype(o_ref.dtype)


def _build_call(n_pad, d, tm, in_dtype, out_dtype, single_buffer_weights):
    """Construct the pallas_call for a given batch tiling / buffering mode."""
    in_itemsize = jnp.dtype(in_dtype).itemsize
    out_itemsize = jnp.dtype(out_dtype).itemsize
    w_kwargs = (
        {"pipeline_mode": pl.Buffered(1)} if single_buffer_weights else {}
    )
    wbuf = 1 if single_buffer_weights else 2

    # VMEM accounting (per TensorCore).
    vmem_need = (
        2 * tm * d * in_itemsize            # x tiles (double-buffered)
        + 2 * tm * d * out_itemsize         # out tiles (double-buffered)
        + wbuf * 2 * d * HIDDEN * 2         # w1 + w2 (bf16, resident)
        + wbuf * (HIDDEN + d) * 4           # biases (f32, resident)
        + tm * d * 2                        # in-kernel bf16 copy of x tile
        + tm * HIDDEN * (4 + 2)             # h in f32 and bf16
        + tm * d * 4                        # y in f32
    )
    vmem_limit = min(max(vmem_need * 3 // 2, 8 * 1024 * 1024), VMEM_LIMIT_CAP)

    # Advisory cost estimate so XLA can schedule around the custom call.
    cost = pl.CostEstimate(
        flops=4 * n_pad * d * HIDDEN,
        transcendentals=0,
        bytes_accessed=(
            n_pad * d * in_itemsize         # x
            + 2 * d * HIDDEN * 2            # w1 + w2 (bf16)
            + (HIDDEN + d) * 4              # biases (f32)
            + n_pad * d * out_itemsize      # output
        ),
    )

    return pl.pallas_call(
        _temporal_fc_kernel,
        out_shape=jax.ShapeDtypeStruct((n_pad, d), out_dtype),
        grid_spec=pltpu.PrefetchScalarGridSpec(
            num_scalar_prefetch=0,
            grid=(n_pad // tm,),
            in_specs=[
                pl.BlockSpec((tm, d), lambda i: (i, 0)),                   # x
                pl.BlockSpec((d, HIDDEN), lambda i: (0, 0), **w_kwargs),   # w1
                pl.BlockSpec((1, HIDDEN), lambda i: (0, 0), **w_kwargs),   # b1
                pl.BlockSpec((HIDDEN, d), lambda i: (0, 0), **w_kwargs),   # w2
                pl.BlockSpec((1, d), lambda i: (0, 0), **w_kwargs),        # b2
            ],
            out_specs=pl.BlockSpec((tm, d), lambda i: (i, 0)),
        ),
        compiler_params=pltpu.CompilerParams(
            dimension_semantics=("parallel",),   # batch tiles -> both TCs
            vmem_limit_bytes=int(vmem_limit),
        ),
        cost_estimate=cost,
    )


def temporal_fc_encoder(x, w1, b1, w2, b2):
    """x: (n, t, f). w1: (t*f, 512), b1: (512,), w2: (512, t*f), b2: (t*f,)."""
    n, t, f = x.shape
    d = t * f

    # Layout glue (weights -> bf16, biases -> f32 row vectors).  x stays in
    # its own dtype; the bf16 cast happens inside the kernel.
    x2 = x.reshape(n, d)
    w1b = w1.astype(jnp.bfloat16)
    w2b = w2.astype(jnp.bfloat16)
    b1_2d = b1.astype(jnp.float32).reshape(1, HIDDEN)
    b2_2d = b2.astype(jnp.float32).reshape(1, d)

    in_itemsize = jnp.dtype(x2.dtype).itemsize
    out_dtype = x.dtype
    out_itemsize = jnp.dtype(out_dtype).itemsize

    # ---- batch-tile selection ----------------------------------------------
    # Target >= 2 grid steps so the "parallel" batch axis can shard across
    # both v7x TensorCores, then clamp tm against d so the streamed tiles and
    # in-kernel temporaries fit a v7x-safe VMEM budget alongside the resident
    # weights (assumed double-buffered for the clamp, worst case).
    n_pad8 = _round_up(n, 8)
    tm_target = _round_up(pl.cdiv(n_pad8, 2), 8)
    per_row_bytes = (
        d * (2 * in_itemsize + 2 * out_itemsize + 2 + 4) + HIDDEN * 6
    )
    weight_bytes = 2 * d * HIDDEN * 2 + (HIDDEN + d) * 4
    stream_budget = max(
        2 * 1024 * 1024, VMEM_LIMIT_CAP - 2 * weight_bytes - 4 * 1024 * 1024
    )
    tm_cap = max(8, (stream_budget // per_row_bytes) // 8 * 8)
    tm = int(max(8, min(tm_target, tm_cap, MAX_TM)))
    # NOTE: for very large t*f the resident bf16 weights themselves outgrow
    # VMEM; that regime needs a K/N-tiled (weight-streaming) grid instead.

    n_pad = _round_up(n, tm)
    if n_pad != n:
        x2 = jnp.pad(x2, ((0, n_pad - n), (0, 0)))

    args = (x2, w1b, b1_2d, w2b, b2_2d)
    try:
        # Preferred: grid-invariant operands single-buffered (pl.Buffered(1)).
        out2 = _build_call(n_pad, d, tm, x2.dtype, out_dtype, True)(*args)
    except Exception:
        # Fallback: default double-buffering (always lowers).
        out2 = _build_call(n_pad, d, tm, x2.dtype, out_dtype, False)(*args)

    if n_pad != n:
        out2 = out2[:n]
    return out2.reshape(n, t, f)


def init_params(key, seqlen, feature_len):
    """Deterministic parameter init (PyTorch Linear-style uniform bounds)."""
    d = seqlen * feature_len
    k1, k2, k3, k4 = jax.random.split(key, 4)
    bound1 = 1.0 / jnp.sqrt(d)
    bound2 = 1.0 / jnp.sqrt(HIDDEN)
    # stored as (in_features, out_features) so the kernel does x @ W
    w1 = jax.random.uniform(k1, (d, HIDDEN), jnp.float32, -bound1, bound1)
    b1 = jax.random.uniform(k2, (HIDDEN,), jnp.float32, -bound1, bound1)
    w2 = jax.random.uniform(k3, (HIDDEN, d), jnp.float32, -bound2, bound2)
    b2 = jax.random.uniform(k4, (d,), jnp.float32, -bound2, bound2)
    return w1, b1, w2, b2


if __name__ == "__main__":
    seqlen, feature_len = 8, 32        # t=8, f=32 -> t*f = 256 (lane-dense)
    n = 2                              # batch

    key = jax.random.PRNGKey(0)
    kx, kp = jax.random.split(key)
    x = jax.random.normal(kx, (n, seqlen, feature_len), jnp.float32)
    w1, b1, w2, b2 = init_params(kp, seqlen, feature_len)

    out = jax.block_until_ready(temporal_fc_encoder(x, w1, b1, w2, b2))

    # Reference check (pure JAX f32, inference-mode dropout).  The kernel uses
    # bf16 operands with f32 accumulation, so the tolerance is relaxed.
    x2 = x.reshape(n, seqlen * feature_len)
    h_ref = x2 @ w1 + b1
    h_ref = jnp.where(h_ref > 0, h_ref, LEAKY_SLOPE * h_ref)
    y_ref = (h_ref @ w2 + b2).reshape(n, seqlen, feature_len)

    assert out.shape == (n, seqlen, feature_len)
    max_err = float(jnp.max(jnp.abs(out - y_ref)))
    assert jnp.allclose(out, y_ref, atol=5e-2, rtol=5e-2), max_err

    print("KERNEL_OK")
</pallas_src>

<mosaic_0001>
module attributes {stable_mosaic.version = 11 : i64} {
  func.func @_temporal_fc_kernel(%arg0: i32, %arg1: memref<8x256xf32, #tpu.memory_space<vmem>>, %arg2: memref<256x512xbf16, #tpu.memory_space<vmem>>, %arg3: memref<1x512xf32, #tpu.memory_space<vmem>>, %arg4: memref<512x256xbf16, #tpu.memory_space<vmem>>, %arg5: memref<1x256xf32, #tpu.memory_space<vmem>>, %arg6: memref<8x256xf32, #tpu.memory_space<vmem>>) attributes {dimension_semantics = [#tpu.dimension_semantics<parallel>], iteration_bounds = array<i64: 1>, scalar_prefetch = 0 : i64, scratch_operands = 0 : i64, tpu.core_type = #tpu.core_type<tc>, window_params = [{transform_indices = @transform_0, window_bounds = array<i64: 8, 256>}, {pipeline_mode = #tpu.pipeline_mode<synchronous>, transform_indices = @transform_1, window_bounds = array<i64: 256, 512>}, {pipeline_mode = #tpu.pipeline_mode<synchronous>, transform_indices = @transform_2, window_bounds = array<i64: 1, 512>}, {pipeline_mode = #tpu.pipeline_mode<synchronous>, transform_indices = @transform_3, window_bounds = array<i64: 512, 256>}, {pipeline_mode = #tpu.pipeline_mode<synchronous>, transform_indices = @transform_4, window_bounds = array<i64: 1, 256>}, {transform_indices = @transform_5, window_bounds = array<i64: 8, 256>}]} {
    %c0 = arith.constant 0 : index
    %c0_0 = arith.constant 0 : index
    %0 = vector.load %arg1[%c0, %c0_0] : memref<8x256xf32, #tpu.memory_space<vmem>>, vector<8x256xf32>
    %1 = arith.truncf %0 : vector<8x256xf32> to vector<8x256xbf16>
    %c0_1 = arith.constant 0 : index
    %c0_2 = arith.constant 0 : index
    %2 = vector.load %arg2[%c0_1, %c0_2] : memref<256x512xbf16, #tpu.memory_space<vmem>>, vector<256x512xbf16>
    %cst = arith.constant dense<0.000000e+00> : vector<8x512xf32>
    %3 = tpu.matmul %1, %2, %cst {dimension_numbers = #tpu.dot_dimension_numbers<[1], [0], [0], [1], [0, 0, 1, 1], [], []>} : vector<8x256xbf16>, vector<256x512xbf16>, vector<8x512xf32> -> vector<8x512xf32>
    %c0_3 = arith.constant 0 : index
    %c0_4 = arith.constant 0 : index
    %4 = vector.load %arg3[%c0_3, %c0_4] : memref<1x512xf32, #tpu.memory_space<vmem>>, vector<1x512xf32>
    %5 = vector.broadcast %4 : vector<1x512xf32> to vector<8x512xf32>
    %6 = arith.addf %3, %5 : vector<8x512xf32>
    %7 = arith.truncf %6 : vector<8x512xf32> to vector<8x512xbf16>
    %cst_5 = arith.constant 1.000980e-02 : bf16
    %8 = vector.broadcast %cst_5 : bf16 to vector<8x512xbf16>
    %9 = arith.mulf %8, %7 : vector<8x512xbf16>
    %10 = arith.maximumf %7, %9 : vector<8x512xbf16>
    %c0_6 = arith.constant 0 : index
    %c0_7 = arith.constant 0 : index
    %11 = vector.load %arg4[%c0_6, %c0_7] : memref<512x256xbf16, #tpu.memory_space<vmem>>, vector<512x256xbf16>
    %cst_8 = arith.constant dense<0.000000e+00> : vector<8x256xf32>
    %12 = tpu.matmul %10, %11, %cst_8 {dimension_numbers = #tpu.dot_dimension_numbers<[1], [0], [0], [1], [0, 0, 1, 1], [], []>} : vector<8x512xbf16>, vector<512x256xbf16>, vector<8x256xf32> -> vector<8x256xf32>
    %c0_9 = arith.constant 0 : index
    %c0_10 = arith.constant 0 : index
    %13 = vector.load %arg5[%c0_9, %c0_10] : memref<1x256xf32, #tpu.memory_space<vmem>>, vector<1x256xf32>
    %14 = vector.broadcast %13 : vector<1x256xf32> to vector<8x256xf32>
    %15 = arith.addf %12, %14 : vector<8x256xf32>
    %c0_11 = arith.constant 0 : index
    %c0_12 = arith.constant 0 : index
    %16 = vector.load %arg6[%c0_11, %c0_12] : memref<8x256xf32, #tpu.memory_space<vmem>>, vector<8x256xf32>
    tpu.vector_store %arg6[%c0_11, %c0_12], %15 {strides = array<i32>} : memref<8x256xf32, #tpu.memory_space<vmem>>, vector<8x256xf32>,
    return
  }
  func.func @transform_0(%arg0: i32) -> (i32, i32) {
    %c0_i32 = arith.constant 0 : i32
    %c0_i32_0 = arith.constant 0 : i32
    return %arg0, %c0_i32 : i32, i32
  }
  func.func @transform_1(%arg0: i32) -> (i32, i32) {
    %c0_i32 = arith.constant 0 : i32
    %c0_i32_0 = arith.constant 0 : i32
    %c0_i32_1 = arith.constant 0 : i32
    return %c0_i32, %c0_i32_0 : i32, i32
  }
  func.func @transform_2(%arg0: i32) -> (i32, i32) {
    %c0_i32 = arith.constant 0 : i32
    %c0_i32_0 = arith.constant 0 : i32
    %c0_i32_1 = arith.constant 0 : i32
    return %c0_i32, %c0_i32_0 : i32, i32
  }
  func.func @transform_3(%arg0: i32) -> (i32, i32) {
    %c0_i32 = arith.constant 0 : i32
    %c0_i32_0 = arith.constant 0 : i32
    %c0_i32_1 = arith.constant 0 : i32
    return %c0_i32, %c0_i32_0 : i32, i32
  }
  func.func @transform_4(%arg0: i32) -> (i32, i32) {
    %c0_i32 = arith.constant 0 : i32
    %c0_i32_0 = arith.constant 0 : i32
    %c0_i32_1 = arith.constant 0 : i32
    return %c0_i32, %c0_i32_0 : i32, i32
  }
  func.func @transform_5(%arg0: i32) -> (i32, i32) {
    %c0_i32 = arith.constant 0 : i32
    %c0_i32_0 = arith.constant 0 : i32
    return %arg0, %c0_i32 : i32, i32
  }
}

module attributes {stable_mosaic.version = 11 : i64} {
  func.func @_temporal_fc_kernel(%arg0: i32, %arg1: memref<8x256xf32, #tpu.memory_space<vmem>>, %arg2: memref<256x512xbf16, #tpu.memory_space<vmem>>, %arg3: memref<1x512xf32, #tpu.memory_space<vmem>>, %arg4: memref<512x256xbf16, #tpu.memory_space<vmem>>, %arg5: memref<1x256xf32, #tpu.memory_space<vmem>>, %arg6: memref<8x256xf32, #tpu.memory_space<vmem>>) attributes {dimension_semantics = [#tpu.dimension_semantics<parallel>], iteration_bounds = array<i64: 1>, scalar_prefetch = 0 : i64, scratch_operands = 0 : i64, tpu.core_type = #tpu.core_type<tc>, window_params = [{transform_indices = @transform_0, window_bounds = array<i64: 8, 256>}, {pipeline_mode = #tpu.pipeline_mode<synchronous>, transform_indices = @transform_1, window_bounds = array<i64: 256, 512>}, {pipeline_mode = #tpu.pipeline_mode<synchronous>, transform_indices = @transform_2, window_bounds = array<i64: 1, 512>}, {pipeline_mode = #tpu.pipeline_mode<synchronous>, transform_indices = @transform_3, window_bounds = array<i64: 512, 256>}, {pipeline_mode = #tpu.pipeline_mode<synchronous>, transform_indices = @transform_4, window_bounds = array<i64: 1, 256>}, {transform_indices = @transform_5, window_bounds = array<i64: 8, 256>}]} {
    %c0 = arith.constant 0 : index
    %c0_0 = arith.constant 0 : index
    %0 = vector.load %arg1[%c0, %c0_0] : memref<8x256xf32, #tpu.memory_space<vmem>>, vector<8x256xf32>
    %1 = arith.truncf %0 : vector<8x256xf32> to vector<8x256xbf16>
    %c0_1 = arith.constant 0 : index
    %c0_2 = arith.constant 0 : index
    %2 = vector.load %arg2[%c0_1, %c0_2] : memref<256x512xbf16, #tpu.memory_space<vmem>>, vector<256x512xbf16>
    %cst = arith.constant dense<0.000000e+00> : vector<8x512xf32>
    %3 = tpu.matmul %1, %2, %cst {dimension_numbers = #tpu.dot_dimension_numbers<[1], [0], [0], [1], [0, 0, 1, 1], [], []>} : vector<8x256xbf16>, vector<256x512xbf16>, vector<8x512xf32> -> vector<8x512xf32>
    %c0_3 = arith.constant 0 : index
    %c0_4 = arith.constant 0 : index
    %4 = vector.load %arg3[%c0_3, %c0_4] : memref<1x512xf32, #tpu.memory_space<vmem>>, vector<1x512xf32>
    %5 = vector.broadcast %4 : vector<1x512xf32> to vector<8x512xf32>
    %6 = arith.addf %3, %5 : vector<8x512xf32>
    %7 = arith.truncf %6 : vector<8x512xf32> to vector<8x512xbf16>
    %cst_5 = arith.constant 1.000980e-02 : bf16
    %8 = vector.broadcast %cst_5 : bf16 to vector<8x512xbf16>
    %9 = arith.mulf %8, %7 : vector<8x512xbf16>
    %10 = arith.maximumf %7, %9 : vector<8x512xbf16>
    %c0_6 = arith.constant 0 : index
    %c0_7 = arith.constant 0 : index
    %11 = vector.load %arg4[%c0_6, %c0_7] : memref<512x256xbf16, #tpu.memory_space<vmem>>, vector<512x256xbf16>
    %cst_8 = arith.constant dense<0.000000e+00> : vector<8x256xf32>
    %12 = tpu.matmul %10, %11, %cst_8 {dimension_numbers = #tpu.dot_dimension_numbers<[1], [0], [0], [1], [0, 0, 1, 1], [], []>} : vector<8x512xbf16>, vector<512x256xbf16>, vector<8x256xf32> -> vector<8x256xf32>
    %c0_9 = arith.constant 0 : index
    %c0_10 = arith.constant 0 : index
    %13 = vector.load %arg5[%c0_9, %c0_10] : memref<1x256xf32, #tpu.memory_space<vmem>>, vector<1x256xf32>
    %14 = vector.broadcast %13 : vector<1x256xf32> to vector<8x256xf32>
    %15 = arith.addf %12, %14 : vector<8x256xf32>
    %c0_11 = arith.constant 0 : index
    %c0_12 = arith.constant 0 : index
    %16 = vector.load %arg6[%c0_11, %c0_12] : memref<8x256xf32, #tpu.memory_space<vmem>>, vector<8x256xf32>
    tpu.vector_store %arg6[%c0_11, %c0_12], %15 {strides = array<i32>} : memref<8x256xf32, #tpu.memory_space<vmem>>, vector<8x256xf32>,
    return
  }
  func.func @transform_0(%arg0: i32) -> (i32, i32) {
    %c0_i32 = arith.constant 0 : i32
    %c0_i32_0 = arith.constant 0 : i32
    return %arg0, %c0_i32 : i32, i32
  }
  func.func @transform_1(%arg0: i32) -> (i32, i32) {
    %c0_i32 = arith.constant 0 : i32
    %c0_i32_0 = arith.constant 0 : i32
    %c0_i32_1 = arith.constant 0 : i32
    return %c0_i32, %c0_i32_0 : i32, i32
  }
  func.func @transform_2(%arg0: i32) -> (i32, i32) {
    %c0_i32 = arith.constant 0 : i32
    %c0_i32_0 = arith.constant 0 : i32
    %c0_i32_1 = arith.constant 0 : i32
    return %c0_i32, %c0_i32_0 : i32, i32
  }
  func.func @transform_3(%arg0: i32) -> (i32, i32) {
    %c0_i32 = arith.constant 0 : i32
    %c0_i32_0 = arith.constant 0 : i32
    %c0_i32_1 = arith.constant 0 : i32
    return %c0_i32, %c0_i32_0 : i32, i32
  }
  func.func @transform_4(%arg0: i32) -> (i32, i32) {
    %c0_i32 = arith.constant 0 : i32
    %c0_i32_0 = arith.constant 0 : i32
    %c0_i32_1 = arith.constant 0 : i32
    return %c0_i32, %c0_i32_0 : i32, i32
  }
  func.func @transform_5(%arg0: i32) -> (i32, i32) {
    %c0_i32 = arith.constant 0 : i32
    %c0_i32_0 = arith.constant 0 : i32
    return %arg0, %c0_i32 : i32, i32
  }
}

</mosaic_0001>

<bundles_post_ra>
// kernel: tpu_custom_call.1
= control target key start
LH: loop header
LB: loop body
LE: loop exit
PB: predicated region body
PF: predicated region fallthrough
CT: control target
= control target key end

     0   :  { %10 = vsyncpa [#allocation3], 0  ;;  %s1609_s0 = inlined_call_operand.hbm [shape: f32[8,256], index: 0, kind: input, shape index: {}]   ;;  %s1610_s1 = inlined_call_operand.hbm [shape: bf16[256,512], index: 1, kind: input, shape index: {}]   ;;  %s1611_s2 = inlined_call_operand.vmem [shape: f32[1,512], index: 2, kind: input, shape index: {}]   ;;  %s1612_s3 = inlined_call_operand.hbm [shape: bf16[512,256], index: 3, kind: input, shape index: {}]   ;;  %s1613_s4 = inlined_call_operand.vmem [shape: f32[1,256], index: 4, kind: input, shape index: {}]   ;;  %s1614_s5 = inlined_call_operand.hbm [shape: f32[8,256], index: 5, kind: output, shape index: {}]  }
   0x1   :  { %11 = vsyncpa [#allocation6], 0 }
   0x2   :  { %12 = vsyncpa [#allocation4], 0  ;;  %s1489_s18 = smov [#allocation5]   ;;  %s1395_s22 = scalar_lea.hbm %s1610_s1, 8192 }
   0x3   :  { %s28_s19 = sshll.u32 %s1489_s18, 4  ;;  %p1396_p0 = scmp.ne.s32.totalorder %s1610_s1, %s1395_s22  ;;  %s29_s19 = int_to_ptr.vmem [resolvable:$true] %s28_s19 }
   0x4   :  { %p1399_p1 = scmp.lt.u32.totalorder %s1395_s22, %s1610_s1 }
   0x6   :  { %p1401_p2 = pnand %p1399_p1, %p1396_p0 }
   0x8   :  { %1404 = shalt.err (!%p1401_p2)
}
   0x9   :  { %s1405_s27 = scalar_lea.vmem %s29_s19, 8192  ;;  %p1410_p4 = scmp.lt.s32.totalorder %s29_s19, %s29_s19 }
   0xa   :  { %p1406_p3 = scmp.ne.s32.totalorder %s29_s19, %s1405_s27  ;;  %p1411_p5 = scmp.lt.s32.totalorder %s1405_s27, %s1405_s27 }
   0xc   :  { %p1412_p6 = por %p1411_p5, %p1410_p4 }
   0xe   :  { %p1413_p7 = pnand %p1412_p6, %p1406_p3 }
  0x10   :  { %1416 = shalt.err (!%p1413_p7)
}
  0x11   :  { %s1490_s28 = smov 256   ;;  %s1491_s29 = smov 16  }
  0x12   :  { %34 = dma.hbm_to_vmem [thread:$0]  %s1610_s1, 8192, %s29_s19, [#allocation6], %s1490_s28, %s1490_s28, %s1491_s29  }
  0x13   :  { %s1492_s7 = smov [#allocation2]   ;;  %s1493_s9 = smov [#allocation7]  }
  0x14   :  { %s19_s8 = sshll.u32 %s1492_s7, 4  ;;  %s42_s10 = sshll.u32 %s1493_s9, 4  ;;  %s20_s8 = int_to_ptr.vmem [resolvable:$true] %s19_s8  ;;  %s43_s10 = int_to_ptr.vmem [resolvable:$true] %s42_s10 }
  0x15   :  { %s1417_s13 = scalar_lea.hbm %s1609_s0, 256 }
  0x16   :  { %p1418_p8 = scmp.ne.s32.totalorder %s1609_s0, %s1417_s13  ;;  %p1421_p9 = scmp.lt.u32.totalorder %s1417_s13, %s1609_s0 }
  0x18   :  { %p1423_p10 = pnand %p1421_p9, %p1418_p8 }
  0x1a   :  { %1426 = shalt.err (!%p1423_p10)
}
  0x1b   :  { %s1427_s1 = scalar_lea.vmem %s20_s8, 256  ;;  %p1432_p12 = scmp.lt.s32.totalorder %s20_s8, %s20_s8 }
  0x1c   :  { %p1428_p11 = scmp.ne.s32.totalorder %s20_s8, %s1427_s1  ;;  %p1433_p13 = scmp.lt.s32.totalorder %s1427_s1, %s1427_s1 }
  0x1e   :  { %p1434_p0 = por %p1433_p13, %p1432_p12 }
  0x20   :  { %p1435_p1 = pnand %p1434_p0, %p1428_p11 }
  0x22   :  { %1438 = shalt.err (!%p1435_p1)
}
  0x23   :  { %22 = dma.hbm_to_vmem [thread:$0]  %s1609_s0, 256, %s20_s8, [#allocation3]  }
  0x24   :  { %s1439_s22 = scalar_lea.hbm %s1612_s3, 8192 }
  0x25   :  { %p1440_p2 = scmp.ne.s32.totalorder %s1612_s3, %s1439_s22  ;;  %p1443_p3 = scmp.lt.u32.totalorder %s1439_s22, %s1612_s3 }
  0x27   :  { %p1445_p4 = pnand %p1443_p3, %p1440_p2 }
  0x29   :  { %1448 = shalt.err (!%p1445_p4)
}
  0x2a   :  { %s1449_s27 = scalar_lea.vmem %s43_s10, 8192  ;;  %p1454_p6 = scmp.lt.s32.totalorder %s43_s10, %s43_s10 }
  0x2b   :  { %p1450_p5 = scmp.ne.s32.totalorder %s43_s10, %s1449_s27  ;;  %p1455_p7 = scmp.lt.s32.totalorder %s1449_s27, %s1449_s27 }
  0x2d   :  { %p1456_p8 = por %p1455_p7, %p1454_p6 }
  0x2f   :  { %p1457_p9 = pnand %p1456_p8, %p1450_p5 }
  0x31   :  { %1460 = shalt.err (!%p1457_p9)
}
  0x32   :  { %s1494_s0 = smov 128   ;;  %s1495_s28 = smov 8  }
  0x33   :  { %48 = dma.hbm_to_vmem [thread:$0]  %s1612_s3, 8192, %s43_s10, [#allocation6], %s1494_s0, %s1494_s0, %s1495_s28  }
  0x34   :  { %1483 = dma.done.wait [#allocation3], 256  }
  0x35   :  { %1484 = vsyncadd [#allocation3], 4294967040 }
  0x36   :  { %1485 = dma.done.wait [#allocation6], 16384  }
  0x37   :  { %1486 = vsyncadd [#allocation6], 4294950912  ;;  %v1203_v0 = vld [vmem:[#allocation5 + $0x4] ss:$16 sps:$4 sm:$0xff]   ;;  %v1205_v1 = vld [vmem:[#allocation5] ss:$16 sps:$4 sm:$0xff]  }
  0x38   :  { %471 = vmatprep.subr.bf16.mxu1 %v1203_v0  ;;  %v1206_v2 = vld [vmem:[#allocation5 + $0x24] ss:$16 sps:$4 sm:$0xff]   ;;  %v1208_v3 = vld [vmem:[#allocation5 + $0x20] ss:$16 sps:$4 sm:$0xff]   ;;  %v62_v13 = vld [vmem:[#allocation2 + $0x8] sm:$0xff]  ;;  %s1496_s8 = smov [#allocation8]  }
  0x39   :  { %472 = vmatpush1.bf16.msra.mxu1 %v1205_v1  ;;  %v1209_v4 = vld [vmem:[#allocation5 + $0x44] ss:$16 sps:$4 sm:$0xff]   ;;  %v1211_v5 = vld [vmem:[#allocation5 + $0x40] ss:$16 sps:$4 sm:$0xff]   ;;  %v1563_v14 = vpack.c.bf16 %v62_v13, %v62_v13  ;;  %v1253_v45 = vld [vmem:[#allocation5 + $0xc] ss:$16 sps:$4 sm:$0xff]  }
  0x3a   :  { %473 = vmatprep.subr.bf16.mxu1 %v1206_v2  ;;  %v1212_v6 = vld [vmem:[#allocation5 + $0x64] ss:$16 sps:$4 sm:$0xff]   ;;  %v1214_v7 = vld [vmem:[#allocation5 + $0x60] ss:$16 sps:$4 sm:$0xff]   ;;  %v1251_v47 = vld [vmem:[#allocation5 + $0x8] ss:$16 sps:$4 sm:$0xff]  }
  0x3b   :  { %v1215_v8 = vld [vmem:[#allocation5 + $0x84] ss:$16 sps:$4 sm:$0xff]   ;;  %v1217_v9 = vld [vmem:[#allocation5 + $0x80] ss:$16 sps:$4 sm:$0xff]   ;;  %503 = vmatprep.mubr.bf16.mxu1 %v1563_v14  ;;  %v1256_v49 = vld [vmem:[#allocation5 + $0x2c] ss:$16 sps:$4 sm:$0xff]  }
  0x3c   :  { %v1218_v10 = vld [vmem:[#allocation5 + $0xa4] ss:$16 sps:$4 sm:$0xff]   ;;  %v1220_v11 = vld [vmem:[#allocation5 + $0xa0] ss:$16 sps:$4 sm:$0xff]   ;;  %v1254_v52 = vld [vmem:[#allocation5 + $0x28] ss:$16 sps:$4 sm:$0xff]  }
  0x3d   :  { %474 = vmatpush1.bf16.msra.mxu1 %v1208_v3  ;;  %v1221_v12 = vld [vmem:[#allocation5 + $0xc4] ss:$16 sps:$4 sm:$0xff]   ;;  %v1223_v15 = vld [vmem:[#allocation5 + $0xc0] ss:$16 sps:$4 sm:$0xff]   ;;  %v1259_v53 = vld [vmem:[#allocation5 + $0x4c] ss:$16 sps:$4 sm:$0xff]  }
  0x3e   :  { %475 = vmatprep.subr.bf16.mxu1 %v1209_v4  ;;  %v1224_v16 = vld [vmem:[#allocation5 + $0xe4] ss:$16 sps:$4 sm:$0xff]   ;;  %v1226_v17 = vld [vmem:[#allocation5 + $0xe0] ss:$16 sps:$4 sm:$0xff]   ;;  %v1257_v56 = vld [vmem:[#allocation5 + $0x48] ss:$16 sps:$4 sm:$0xff]  }
  0x3f   :  { %v1227_v18 = vld [vmem:[#allocation5 + $0x104] ss:$16 sps:$4 sm:$0xff]   ;;  %v1229_v19 = vld [vmem:[#allocation5 + $0x100] ss:$16 sps:$4 sm:$0xff]   ;;  %v1262_v57 = vld [vmem:[#allocation5 + $0x6c] ss:$16 sps:$4 sm:$0xff]  }
  0x40   :  { %v1230_v20 = vld [vmem:[#allocation5 + $0x124] ss:$16 sps:$4 sm:$0xff]   ;;  %v1232_v21 = vld [vmem:[#allocation5 + $0x120] ss:$16 sps:$4 sm:$0xff]   ;;  %v1260_v60 = vld [vmem:[#allocation5 + $0x68] ss:$16 sps:$4 sm:$0xff]  }
  0x41   :  { %476 = vmatpush1.bf16.msra.mxu1 %v1211_v5  ;;  %v1233_v22 = vld [vmem:[#allocation5 + $0x144] ss:$16 sps:$4 sm:$0xff]   ;;  %v1235_v23 = vld [vmem:[#allocation5 + $0x140] ss:$16 sps:$4 sm:$0xff]   ;;  %v1265_v61 = vld [vmem:[#allocation5 + $0x8c] ss:$16 sps:$4 sm:$0xff]  }
  0x42   :  { %477 = vmatprep.subr.bf16.mxu1 %v1212_v6  ;;  %v1236_v24 = vld [vmem:[#allocation5 + $0x164] ss:$16 sps:$4 sm:$0xff]   ;;  %v1238_v25 = vld [vmem:[#allocation5 + $0x160] ss:$16 sps:$4 sm:$0xff]   ;;  %v1263_v0 = vld [vmem:[#allocation5 + $0x88] ss:$16 sps:$4 sm:$0xff]  }
  0x43   :  { %v1239_v26 = vld [vmem:[#allocation5 + $0x184] ss:$16 sps:$4 sm:$0xff]   ;;  %v1301_v28 = vld [vmem:[#allocation7] ss:$8 sps:$4 sm:$0xff]   ;;  %v1304_v31 = vld [vmem:[#allocation7 + $0x10] ss:$8 sps:$4 sm:$0xff]  }
  0x44   :  { %v1299_v27 = vld [vmem:[#allocation7 + $0x4] ss:$8 sps:$4 sm:$0xff]   ;;  %v1302_v29 = vld [vmem:[#allocation7 + $0x14] ss:$8 sps:$4 sm:$0xff]   ;;  %v1241_v30 = vld [vmem:[#allocation5 + $0x180] ss:$16 sps:$4 sm:$0xff]  }
  0x45   :  { %478 = vmatpush1.bf16.msra.mxu1 %v1214_v7  ;;  %961 = vmatprep.subr.bf16.mxu0 %v1299_v27  ;;  %v1242_v32 = vld [vmem:[#allocation5 + $0x1a4] ss:$16 sps:$4 sm:$0xff]   ;;  %v1244_v34 = vld [vmem:[#allocation5 + $0x1a0] ss:$16 sps:$4 sm:$0xff]   ;;  %v1268_v1 = vld [vmem:[#allocation5 + $0xac] ss:$16 sps:$4 sm:$0xff]  }
  0x46   :  { %479 = vmatprep.subr.bf16.mxu1 %v1215_v8  ;;  %962 = vmatpush1.bf16.msra.mxu0 %v1301_v28  ;;  %v1305_v33 = vld [vmem:[#allocation7 + $0x24] ss:$8 sps:$4 sm:$0xff]   ;;  %v1307_v35 = vld [vmem:[#allocation7 + $0x20] ss:$8 sps:$4 sm:$0xff]   ;;  %v1308_v37 = vld [vmem:[#allocation7 + $0x34] ss:$8 sps:$4 sm:$0xff]  }
  0x47   :  { %963 = vmatprep.subr.bf16.mxu0 %v1302_v29  ;;  %v1245_v36 = vld [vmem:[#allocation5 + $0x1c4] ss:$16 sps:$4 sm:$0xff]   ;;  %v1247_v38 = vld [vmem:[#allocation5 + $0x1c0] ss:$16 sps:$4 sm:$0xff]   ;;  %v1266_v4 = vld [vmem:[#allocation5 + $0xa8] ss:$16 sps:$4 sm:$0xff]  }
  0x48   :  { %v1310_v39 = vld [vmem:[#allocation7 + $0x30] ss:$8 sps:$4 sm:$0xff]   ;;  %v1248_v40 = vld [vmem:[#allocation5 + $0x1e4] ss:$16 sps:$4 sm:$0xff]   ;;  %v1313_v44 = vld [vmem:[#allocation7 + $0x40] ss:$8 sps:$4 sm:$0xff]  }
  0x49   :  { %480 = vmatpush1.bf16.msra.mxu1 %v1217_v9  ;;  %v1311_v41 = vld [vmem:[#allocation7 + $0x44] ss:$8 sps:$4 sm:$0xff]   ;;  %v1250_v42 = vld [vmem:[#allocation5 + $0x1e0] ss:$16 sps:$4 sm:$0xff]   ;;  %v1314_v46 = vld [vmem:[#allocation7 + $0x54] ss:$8 sps:$4 sm:$0xff]  }
  0x4a   :  { %481 = vmatprep.subr.bf16.mxu1 %v1218_v10  ;;  %964 = vmatpush1.bf16.msra.mxu0 %v1304_v31  ;;  %v61_v43 = vld [vmem:[#allocation2] sm:$0xff]  ;;  %v1317_v51 = vld [vmem:[#allocation7 + $0x64] ss:$8 sps:$4 sm:$0xff]   ;;  %v1319_v54 = vld [vmem:[#allocation7 + $0x60] ss:$8 sps:$4 sm:$0xff]   ;;  %s1051_s9 = sshll.u32 %s1496_s8, 4  ;;  %s1052_s9 = int_to_ptr.vmem [resolvable:$true] %s1051_s9 }
  0x4b   :  { %965 = vmatprep.subr.bf16.mxu0 %v1305_v33  ;;  %v1566_v48 = vpack.c.bf16 %v61_v43, %v61_v43  ;;  %v1316_v50 = vld [vmem:[#allocation7 + $0x50] ss:$8 sps:$4 sm:$0xff]   ;;  %v1320_v55 = vld [vmem:[#allocation7 + $0x74] ss:$8 sps:$4 sm:$0xff]   ;;  %v1323_v59 = vld [vmem:[#allocation7 + $0x84] ss:$8 sps:$4 sm:$0xff]   ;;  %p1466_p11 = scmp.lt.s32.totalorder %s1052_s9, %s1052_s9 }
  0x4c   :  { %v1322_v58 = vld [vmem:[#allocation7 + $0x70] ss:$8 sps:$4 sm:$0xff]   ;;  %v1325_v62 = vld [vmem:[#allocation7 + $0x80] ss:$8 sps:$4 sm:$0xff]   ;;  %v1326_v63 = vld [vmem:[#allocation7 + $0x94] ss:$8 sps:$4 sm:$0xff]  }
  0x4d   :  { %482 = vmatpush1.bf16.msra.mxu1 %v1220_v11  ;;  %v1328_v2 = vld [vmem:[#allocation7 + $0x90] ss:$8 sps:$4 sm:$0xff]   ;;  %v1329_v3 = vld [vmem:[#allocation7 + $0xa4] ss:$8 sps:$4 sm:$0xff]   ;;  %v1331_v6 = vld [vmem:[#allocation7 + $0xa0] ss:$8 sps:$4 sm:$0xff]  }
  0x4e   :  { %483 = vmatprep.subr.bf16.mxu1 %v1221_v12  ;;  %966 = vmatpush1.bf16.msra.mxu0 %v1307_v35  ;;  %v1271_v5 = vld [vmem:[#allocation5 + $0xcc] ss:$16 sps:$4 sm:$0xff]   ;;  %v1269_v8 = vld [vmem:[#allocation5 + $0xc8] ss:$16 sps:$4 sm:$0xff]   ;;  %s1461_s10 = scalar_lea.vmem %s1052_s9, 256 }
  0x4f   :  { %967 = vmatprep.subr.bf16.mxu0 %v1308_v37  ;;  %v1332_v7 = vld [vmem:[#allocation7 + $0xb4] ss:$8 sps:$4 sm:$0xff]   ;;  %v1334_v10 = vld [vmem:[#allocation7 + $0xb0] ss:$8 sps:$4 sm:$0xff]   ;;  %v1335_v11 = vld [vmem:[#allocation7 + $0xc4] ss:$8 sps:$4 sm:$0xff]   ;;  %v131_v37 = vlaneseq  ;;  %p1462_p10 = scmp.ne.s32.totalorder %s1052_s9, %s1461_s10  ;;  %p1467_p12 = scmp.lt.s32.totalorder %s1461_s10, %s1461_s10 }
  0x50   :  { %v1274_v9 = vld [vmem:[#allocation5 + $0xec] ss:$16 sps:$4 sm:$0xff]   ;;  %v1272_v12 = vld [vmem:[#allocation5 + $0xe8] ss:$16 sps:$4 sm:$0xff]  }
  0x51   :  { %484 = vmatpush1.bf16.msra.mxu1 %v1223_v15  ;;  %v1277_v13 = vld [vmem:[#allocation5 + $0x10c] ss:$16 sps:$4 sm:$0xff]   ;;  %v1293_v28 = vld [vmem:[#allocation5 + $0x1c8] ss:$16 sps:$4 sm:$0xff]   ;;  %p1468_p13 = por %p1467_p12, %p1466_p11 }
  0x52   :  { %485 = vmatprep.subr.bf16.mxu1 %v1224_v16  ;;  %968 = vmatpush1.bf16.msra.mxu0 %v1310_v39  ;;  %v1338_v15 = vld [vmem:[#allocation7 + $0xd4] ss:$8 sps:$4 sm:$0xff]   ;;  %v1275_v16 = vld [vmem:[#allocation5 + $0x108] ss:$16 sps:$4 sm:$0xff]  }
  0x53   :  { %969 = vmatprep.subr.bf16.mxu0 %v1311_v41  ;;  %v1295_v27 = vld [vmem:[#allocation5 + $0x1cc] ss:$16 sps:$4 sm:$0xff]   ;;  %v1340_v31 = vld [vmem:[#allocation7 + $0xd0] ss:$8 sps:$4 sm:$0xff]   ;;  %v1343_v33 = vld [vmem:[#allocation7 + $0xe0] ss:$8 sps:$4 sm:$0xff]   ;;  %p1469_p0 = pnand %p1468_p13, %p1462_p10 }
  0x54   :  { %v1298_v29 = vld [vmem:[#allocation5 + $0x1ec] ss:$16 sps:$4 sm:$0xff]   ;;  %v1346_v35 = vld [vmem:[#allocation7 + $0xf0] ss:$8 sps:$4 sm:$0xff]  }
  0x55   :  { %486 = vmatpush1.bf16.msra.mxu1 %v1226_v17  ;;  %v1280_v17 = vld [vmem:[#allocation5 + $0x12c] ss:$16 sps:$4 sm:$0xff]  }
  0x56   :  { %487 = vmatprep.subr.bf16.mxu1 %v1227_v18  ;;  %970 = vmatpush1.bf16.msra.mxu0 %v1313_v44  ;;  %v1278_v18 = vld [vmem:[#allocation5 + $0x128] ss:$16 sps:$4 sm:$0xff]  }
  0x57   :  { %971 = vmatprep.subr.bf16.mxu0 %v1314_v46 }
  0x59   :  { %488 = vmatpush1.bf16.msra.mxu1 %v1229_v19  ;;  %v1283_v19 = vld [vmem:[#allocation5 + $0x14c] ss:$16 sps:$4 sm:$0xff]  }
  0x5a   :  { %489 = vmatprep.subr.bf16.mxu1 %v1230_v20  ;;  %972 = vmatpush1.bf16.msra.mxu0 %v1316_v50  ;;  %v1281_v20 = vld [vmem:[#allocation5 + $0x148] ss:$16 sps:$4 sm:$0xff]  }
  0x5b   :  { %973 = vmatprep.subr.bf16.mxu0 %v1317_v51 }
  0x5d   :  { %490 = vmatpush1.bf16.msra.mxu1 %v1232_v21  ;;  %v1286_v21 = vld [vmem:[#allocation5 + $0x16c] ss:$16 sps:$4 sm:$0xff]  }
  0x5e   :  { %491 = vmatprep.subr.bf16.mxu1 %v1233_v22  ;;  %974 = vmatpush1.bf16.msra.mxu0 %v1319_v54  ;;  %v1284_v22 = vld [vmem:[#allocation5 + $0x168] ss:$16 sps:$4 sm:$0xff]  }
  0x5f   :  { %975 = vmatprep.subr.bf16.mxu0 %v1320_v55  ;;  %v1347_v55 = vld [vmem:[#allocation7 + $0x100] ss:$8 sps:$4 sm:$0xff]  }
  0x61   :  { %492 = vmatpush1.bf16.msra.mxu1 %v1235_v23  ;;  %v1289_v23 = vld [vmem:[#allocation5 + $0x18c] ss:$16 sps:$4 sm:$0xff]  }
  0x62   :  { %493 = vmatprep.subr.bf16.mxu1 %v1236_v24  ;;  %976 = vmatpush1.bf16.msra.mxu0 %v1322_v58  ;;  %v1287_v24 = vld [vmem:[#allocation5 + $0x188] ss:$16 sps:$4 sm:$0xff]  }
  0x63   :  { %977 = vmatprep.subr.bf16.mxu0 %v1323_v59  ;;  %v1350_v58 = vld [vmem:[#allocation7 + $0x110] ss:$8 sps:$4 sm:$0xff]   ;;  %v1355_v59 = vld [vmem:[#allocation7 + $0x124] ss:$8 sps:$4 sm:$0xff]  }
  0x65   :  { %494 = vmatpush1.bf16.msra.mxu1 %v1238_v25  ;;  %v1292_v25 = vld [vmem:[#allocation5 + $0x1ac] ss:$16 sps:$4 sm:$0xff]  }
  0x66   :  { %495 = vmatprep.subr.bf16.mxu1 %v1239_v26  ;;  %978 = vmatpush1.bf16.msra.mxu0 %v1325_v62  ;;  %v1290_v26 = vld [vmem:[#allocation5 + $0x1a8] ss:$16 sps:$4 sm:$0xff]  }
  0x67   :  { %979 = vmatprep.subr.bf16.mxu0 %v1326_v63  ;;  %v1356_v62 = vld [vmem:[#allocation7 + $0x130] ss:$8 sps:$4 sm:$0xff]   ;;  %v1361_v63 = vld [vmem:[#allocation7 + $0x144] ss:$8 sps:$4 sm:$0xff]  }
  0x69   :  { %496 = vmatpush1.bf16.msra.mxu1 %v1241_v30  ;;  %v1296_v30 = vld [vmem:[#allocation5 + $0x1e8] ss:$16 sps:$4 sm:$0xff]  }
  0x6a   :  { %497 = vmatprep.subr.bf16.mxu1 %v1242_v32  ;;  %980 = vmatpush1.bf16.msra.mxu0 %v1328_v2  ;;  %v1341_v32 = vld [vmem:[#allocation7 + $0xe4] ss:$8 sps:$4 sm:$0xff]   ;;  %v1362_v2 = vld [vmem:[#allocation7 + $0x150] ss:$8 sps:$4 sm:$0xff]  }
  0x6b   :  { %981 = vmatprep.subr.bf16.mxu0 %v1329_v3  ;;  %v1367_v3 = vld [vmem:[#allocation7 + $0x164] ss:$8 sps:$4 sm:$0xff]  }
  0x6d   :  { %498 = vmatpush1.bf16.msra.mxu1 %v1244_v34  ;;  %v1344_v34 = vld [vmem:[#allocation7 + $0xf4] ss:$8 sps:$4 sm:$0xff]  }
  0x6e   :  { %499 = vmatprep.subr.bf16.mxu1 %v1245_v36  ;;  %982 = vmatpush1.bf16.msra.mxu0 %v1331_v6  ;;  %v1349_v36 = vld [vmem:[#allocation7 + $0x104] ss:$8 sps:$4 sm:$0xff]   ;;  %v1368_v6 = vld [vmem:[#allocation7 + $0x170] ss:$8 sps:$4 sm:$0xff]  }
  0x6f   :  { %983 = vmatprep.subr.bf16.mxu0 %v1332_v7  ;;  %v1373_v7 = vld [vmem:[#allocation7 + $0x184] ss:$8 sps:$4 sm:$0xff]  }
  0x71   :  { %500 = vmatpush1.bf16.msra.mxu1 %v1247_v38  ;;  %v1571_v38 = vshrl.u32 %v131_v37, 7 }
  0x72   :  { %501 = vmatprep.subr.bf16.mxu1 %v1248_v40  ;;  %984 = vmatpush1.bf16.msra.mxu0 %v1334_v10  ;;  %v1577_v40 = vld [vmem:[%s1611_s2] sm:$0xf] }
  0x73   :  { %985 = vmatprep.subr.bf16.mxu0 %v1335_v11  ;;  %v133_v39 = vsub.s32 0, %v1571_v38  ;;  %v137_v41 = vsub.s32 1, %v1571_v38  ;;  %v1374_v10 = vld [vmem:[#allocation7 + $0x190] ss:$8 sps:$4 sm:$0xff]   ;;  %v1379_v11 = vld [vmem:[#allocation7 + $0x1a4] ss:$8 sps:$4 sm:$0xff]  }
  0x75   :  { %502 = vmatpush1.bf16.msra.mxu1 %v1250_v42  ;;  %v134_v42 = vrot.slane %v1577_v40, %v133_v39  ;;  %v138_v43 = vrot.slane %v1577_v40, %v137_v41 }
  0x76   :  { %512 = vmatprep.subr.bf16.mxu1 %v1253_v45 }
  0x78   :  { %504 = vmatmul.mubr.bf16.vlgmr.msra.gmra.mrb[0].mxu1 %v1566_v48 }
  0x79   :  { %513 = vmatpush1.bf16.msra.mxu1 %v1251_v47  ;;  %544 = vmatprep.mubr.bf16.mxu1 %v1563_v14  ;;  %v1337_v14 = vld [vmem:[#allocation7 + $0xc0] ss:$8 sps:$4 sm:$0xff]  }
  0x7a   :  { %514 = vmatprep.subr.bf16.mxu1 %v1256_v49  ;;  %986 = vmatpush1.bf16.msra.mxu0 %v1337_v14  ;;  %v1380_v14 = vld [vmem:[#allocation7 + $0x1b0] ss:$8 sps:$4 sm:$0xff]  }
  0x7b   :  { %987 = vmatprep.subr.bf16.mxu0 %v1338_v15  ;;  %v1385_v15 = vld [vmem:[#allocation7 + $0x1c4] ss:$8 sps:$4 sm:$0xff]  }
  0x7d   :  { %515 = vmatpush1.bf16.msra.mxu1 %v1254_v52 }
  0x7e   :  { %516 = vmatprep.subr.bf16.mxu1 %v1259_v53  ;;  %988 = vmatpush1.bf16.msra.mxu0 %v1340_v31 }
  0x7f   :  { %989 = vmatprep.subr.bf16.mxu0 %v1341_v32 }
  0x81   :  { %517 = vmatpush1.bf16.msra.mxu1 %v1257_v56 }
  0x82   :  { %518 = vmatprep.subr.bf16.mxu1 %v1262_v57  ;;  %990 = vmatpush1.bf16.msra.mxu0 %v1343_v33  ;;  %v1352_v57 = vld [vmem:[#allocation7 + $0x114] ss:$8 sps:$4 sm:$0xff]  }
  0x83   :  { %991 = vmatprep.subr.bf16.mxu0 %v1344_v34  ;;  %v1392_v34 = vld [vmem:[#allocation7 + $0x1f0] ss:$8 sps:$4 sm:$0xff]  }
  0x85   :  { %519 = vmatpush1.bf16.msra.mxu1 %v1260_v60  ;;  %v1353_v60 = vld [vmem:[#allocation7 + $0x120] ss:$8 sps:$4 sm:$0xff]  }
  0x86   :  { %520 = vmatprep.subr.bf16.mxu1 %v1265_v61  ;;  %992 = vmatpush1.bf16.msra.mxu0 %v1346_v35  ;;  %v1358_v61 = vld [vmem:[#allocation7 + $0x134] ss:$8 sps:$4 sm:$0xff]  }
  0x87   :  { %1002 = vmatprep.subr.bf16.mxu0 %v1349_v36 }
  0x89   :  { %521 = vmatpush1.bf16.msra.mxu1 %v1263_v0  ;;  %v1359_v0 = vld [vmem:[#allocation7 + $0x140] ss:$8 sps:$4 sm:$0xff]  }
  0x8a   :  { %522 = vmatprep.subr.bf16.mxu1 %v1268_v1  ;;  %v1364_v1 = vld [vmem:[#allocation7 + $0x154] ss:$8 sps:$4 sm:$0xff]  }
  0x8d   :  { %523 = vmatpush1.bf16.msra.mxu1 %v1266_v4  ;;  %v1365_v4 = vld [vmem:[#allocation7 + $0x160] ss:$8 sps:$4 sm:$0xff]  }
  0x8e   :  { %524 = vmatprep.subr.bf16.mxu1 %v1271_v5  ;;  %v1370_v5 = vld [vmem:[#allocation7 + $0x174] ss:$8 sps:$4 sm:$0xff]  }
  0x91   :  { %525 = vmatpush1.bf16.msra.mxu1 %v1269_v8  ;;  %v1371_v8 = vld [vmem:[#allocation7 + $0x180] ss:$8 sps:$4 sm:$0xff]  }
  0x92   :  { %526 = vmatprep.subr.bf16.mxu1 %v1274_v9  ;;  %v1376_v9 = vld [vmem:[#allocation7 + $0x194] ss:$8 sps:$4 sm:$0xff]  }
  0x95   :  { %527 = vmatpush1.bf16.msra.mxu1 %v1272_v12  ;;  %v1377_v12 = vld [vmem:[#allocation7 + $0x1a0] ss:$8 sps:$4 sm:$0xff]  }
  0x96   :  { %528 = vmatprep.subr.bf16.mxu1 %v1277_v13  ;;  %v1382_v13 = vld [vmem:[#allocation7 + $0x1b4] ss:$8 sps:$4 sm:$0xff]  }
  0x99   :  { %529 = vmatpush1.bf16.msra.mxu1 %v1275_v16  ;;  %v1383_v16 = vld [vmem:[#allocation7 + $0x1c0] ss:$8 sps:$4 sm:$0xff]  }
  0x9a   :  { %530 = vmatprep.subr.bf16.mxu1 %v1280_v17  ;;  %v1388_v17 = vld [vmem:[#allocation7 + $0x1d4] ss:$8 sps:$4 sm:$0xff]  }
  0x9d   :  { %531 = vmatpush1.bf16.msra.mxu1 %v1278_v18  ;;  %v141_v18 = vsub.s32 2, %v1571_v38 }
  0x9e   :  { %532 = vmatprep.subr.bf16.mxu1 %v1283_v19  ;;  %v145_v19 = vsub.s32 3, %v1571_v38 }
  0xa1   :  { %533 = vmatpush1.bf16.msra.mxu1 %v1281_v20  ;;  %v1386_v20 = vld [vmem:[#allocation7 + $0x1d0] ss:$8 sps:$4 sm:$0xff]  }
  0xa2   :  { %534 = vmatprep.subr.bf16.mxu1 %v1286_v21  ;;  %v142_v21 = vrot.slane %v1577_v40, %v141_v18 }
  0xa5   :  { %535 = vmatpush1.bf16.msra.mxu1 %v1284_v22  ;;  %v1391_v22 = vld [vmem:[#allocation7 + $0x1e4] ss:$8 sps:$4 sm:$0xff]  }
  0xa6   :  { %536 = vmatprep.subr.bf16.mxu1 %v1289_v23  ;;  %v146_v23 = vrot.slane %v1577_v40, %v145_v19 }
  0xa9   :  { %537 = vmatpush1.bf16.msra.mxu1 %v1287_v24 }
  0xaa   :  { %538 = vmatprep.subr.bf16.mxu1 %v1292_v25  ;;  %v1389_v25 = vld [vmem:[#allocation7 + $0x1e0] ss:$8 sps:$4 sm:$0xff]  }
  0xad   :  { %539 = vmatpush1.bf16.msra.mxu1 %v1290_v26 }
  0xae   :  { %540 = vmatprep.subr.bf16.mxu1 %v1295_v27 }
  0xb1   :  { %541 = vmatpush1.bf16.msra.mxu1 %v1293_v28  ;;  %v1394_v28 = vld [vmem:[#allocation7 + $0x1f4] ss:$8 sps:$4 sm:$0xff]  }
  0xb2   :  { %542 = vmatprep.subr.bf16.mxu1 %v1298_v29 }
  0xb5   :  { %543 = vmatpush1.bf16.msra.mxu1 %v1296_v30 }
  0xb8   :  { %545 = vmatmul.mubr.bf16.vlgmr.msra.gmra.mrb[4].mxu1 %v1566_v48 }
 0x14b   :  { %v505_v44 = vpop.f32.mrb[0].mxu1 }
 0x14c   :  { %v506_v45 = vadd.f32 %v505_v44, %v134_v42  ;;  %v507_v46 = vpop.f32.mrb[1].mxu1  ;;  %v629_v42 = vld [vmem:[%s1613_s4] sm:$0x3] }
 0x14d   :  { %v508_v47 = vadd.f32 %v507_v46, %v138_v43  ;;  %v509_v48 = vpop.f32.mrb[2].mxu1  ;;  %v634_v43 = vrot.slane %v629_v42, %v133_v39  ;;  %v638_v44 = vrot.slane %v629_v42, %v137_v41 }
 0x14e   :  { %v553_v49 = vpack.c.bf16 %v506_v45, %v506_v45  ;;  %v510_v50 = vpop.f32.mrb[3].mxu1 }
 0x14f   :  { %v554_v51 = vpack.c.bf16 %v508_v47, %v508_v47 }
 0x150   :  { %v557_v52 = vmul.bf16 1009007652, %v553_v49 }
 0x151   :  { %v558_v53 = vmul.bf16 1009007652, %v554_v51 }
 0x152   :  { %v561_v56 = vmax.bf16 %v557_v52, %v553_v49 }
 0x153   :  { %v562_v54 = vmax.bf16 %v558_v53, %v554_v51 }
 0x155   :  { %993 = vmatprep.mubr.bf16.mxu0 %v562_v54 }
 0x156   :  { %994 = vmatmul.mubr.bf16.vlgmr.msra.gmra.mrb[0].mxu0 %v561_v56 }
 0x157   :  { %1003 = vmatpush1.bf16.msra.mxu0 %v1347_v55 }
 0x158   :  { %1004 = vmatprep.subr.bf16.mxu0 %v1352_v57 }
 0x15b   :  { %1005 = vmatpush1.bf16.msra.mxu0 %v1350_v58 }
 0x15c   :  { %1006 = vmatprep.subr.bf16.mxu0 %v1355_v59 }
 0x15f   :  { %1007 = vmatpush1.bf16.msra.mxu0 %v1353_v60 }
 0x160   :  { %1008 = vmatprep.subr.bf16.mxu0 %v1358_v61 }
 0x163   :  { %1009 = vmatpush1.bf16.msra.mxu0 %v1356_v62 }
 0x164   :  { %1010 = vmatprep.subr.bf16.mxu0 %v1361_v63 }
 0x167   :  { %1011 = vmatpush1.bf16.msra.mxu0 %v1359_v0 }
 0x168   :  { %1012 = vmatprep.subr.bf16.mxu0 %v1364_v1 }
 0x16b   :  { %1013 = vmatpush1.bf16.msra.mxu0 %v1362_v2 }
 0x16c   :  { %1014 = vmatprep.subr.bf16.mxu0 %v1367_v3 }
 0x16f   :  { %1015 = vmatpush1.bf16.msra.mxu0 %v1365_v4 }
 0x170   :  { %1016 = vmatprep.subr.bf16.mxu0 %v1370_v5 }
 0x173   :  { %1017 = vmatpush1.bf16.msra.mxu0 %v1368_v6 }
 0x174   :  { %1018 = vmatprep.subr.bf16.mxu0 %v1373_v7 }
 0x177   :  { %1019 = vmatpush1.bf16.msra.mxu0 %v1371_v8 }
 0x178   :  { %1020 = vmatprep.subr.bf16.mxu0 %v1376_v9 }
 0x17b   :  { %1021 = vmatpush1.bf16.msra.mxu0 %v1374_v10 }
 0x17c   :  { %1022 = vmatprep.subr.bf16.mxu0 %v1379_v11 }
 0x17f   :  { %1023 = vmatpush1.bf16.msra.mxu0 %v1377_v12 }
 0x180   :  { %1024 = vmatprep.subr.bf16.mxu0 %v1382_v13 }
 0x183   :  { %1025 = vmatpush1.bf16.msra.mxu0 %v1380_v14 }
 0x184   :  { %1026 = vmatprep.subr.bf16.mxu0 %v1385_v15 }
 0x187   :  { %1027 = vmatpush1.bf16.msra.mxu0 %v1383_v16 }
 0x188   :  { %1028 = vmatprep.subr.bf16.mxu0 %v1388_v17 }
 0x18b   :  { %v546_v24 = vpop.f32.mrb[4].mxu1  ;;  %1029 = vmatpush1.bf16.msra.mxu0 %v1386_v20 }
 0x18c   :  { %v547_v26 = vadd.f32 %v546_v24, %v142_v21  ;;  %v548_v27 = vpop.f32.mrb[5].mxu1  ;;  %1030 = vmatprep.subr.bf16.mxu0 %v1391_v22 }
 0x18d   :  { %v549_v29 = vadd.f32 %v548_v27, %v146_v23  ;;  %v550_v30 = vpop.f32.mrb[6].mxu1 }
 0x18e   :  { %v555_v31 = vpack.c.bf16 %v547_v26, %v547_v26  ;;  %v551_v32 = vpop.f32.mrb[7].mxu1 }
 0x18f   :  { %v556_v33 = vpack.c.bf16 %v549_v29, %v549_v29  ;;  %1031 = vmatpush1.bf16.msra.mxu0 %v1389_v25 }
 0x190   :  { %v559_v35 = vmul.bf16 1009007652, %v555_v31  ;;  %1032 = vmatprep.subr.bf16.mxu0 %v1394_v28 }
 0x191   :  { %v560_v36 = vmul.bf16 1009007652, %v556_v33 }
 0x192   :  { %v563_v40 = vmax.bf16 %v559_v35, %v555_v31 }
 0x193   :  { %v564_v37 = vmax.bf16 %v560_v36, %v556_v33  ;;  %1033 = vmatpush1.bf16.msra.mxu0 %v1392_v34 }
 0x195   :  { %1034 = vmatprep.mubr.bf16.mxu0 %v564_v37 }
 0x196   :  { %1035 = vmatmul.mubr.bf16.vlgmr.msra.gmra.mrb[0].mxu0 %v563_v40 }
 0x269   :  { %v1036_v45 = vpop.f32.mrb[0].mxu0 }
 0x26a   :  { %v1189_v46 = vadd.f32 %v1036_v45, %v634_v43  ;;  %v1038_v47 = vpop.f32.mrb[1].mxu0 }
 0x26b   :  { %v1190_v48 = vadd.f32 %v1038_v47, %v638_v44  ;;  %v1040_v49 = vpop.f32.mrb[2].mxu0 }
 0x26c   :  { %1043 = vst [vmem:[#allocation8] sm:$0xff] %v1189_v46  ;;  %v1041_v50 = vpop.f32.mrb[3].mxu0 }
 0x26d   :  { %1044 = vst [vmem:[#allocation8 + $0x8] sm:$0xff] %v1190_v48 }
 0x26e   :  { %1472 = shalt.err (!%p1469_p0)
}
 0x26f   :  { %s1473_s12 = scalar_lea.hbm %s1614_s5, 256 }
 0x270   :  { %p1474_p1 = scmp.ne.s32.totalorder %s1614_s5, %s1473_s12  ;;  %p1477_p2 = scmp.lt.u32.totalorder %s1473_s12, %s1614_s5 }
 0x272   :  { %p1479_p3 = pnand %p1477_p2, %p1474_p1 }
 0x274   :  { %1482 = shalt.err (!%p1479_p3)
}
 0x275   :  { %1054 = dma.vmem_to_hbm [thread:$0]  %s1052_s9, 256, %s1614_s5, [#allocation4]  }
 0x276   :  { %1487 = dma.done.wait [#allocation4], 256  }
 0x277   :  { %1488 = vsyncadd [#allocation4], 4294967040 }
 0x278   :  { %1058 = vsyncpa [#allocation3], 1 }
 0x279   :  { %1059 = vsyncpa [#allocation6], 1 }
 0x27a   :  { %1060 = vsyncpa [#allocation4], 1 }

// kernel: tpu_custom_call.1
= control target key start
LH: loop header
LB: loop body
LE: loop exit
PB: predicated region body
PF: predicated region fallthrough
CT: control target
= control target key end

     0   :  { %10 = vsyncpa [#allocation3], 0  ;;  %s1609_s0 = inlined_call_operand.hbm [shape: f32[8,256], index: 0, kind: input, shape index: {}]   ;;  %s1610_s1 = inlined_call_operand.hbm [shape: bf16[256,512], index: 1, kind: input, shape index: {}]   ;;  %s1611_s2 = inlined_call_operand.vmem [shape: f32[1,512], index: 2, kind: input, shape index: {}]   ;;  %s1612_s3 = inlined_call_operand.hbm [shape: bf16[512,256], index: 3, kind: input, shape index: {}]   ;;  %s1613_s4 = inlined_call_operand.vmem [shape: f32[1,256], index: 4, kind: input, shape index: {}]   ;;  %s1614_s5 = inlined_call_operand.hbm [shape: f32[8,256], index: 5, kind: output, shape index: {}]  }
   0x1   :  { %11 = vsyncpa [#allocation6], 0 }
   0x2   :  { %12 = vsyncpa [#allocation4], 0  ;;  %s1489_s18 = smov [#allocation5]   ;;  %s1395_s22 = scalar_lea.hbm %s1610_s1, 8192 }
   0x3   :  { %s28_s19 = sshll.u32 %s1489_s18, 4  ;;  %p1396_p0 = scmp.ne.s32.totalorder %s1610_s1, %s1395_s22  ;;  %s29_s19 = int_to_ptr.vmem [resolvable:$true] %s28_s19 }
   0x4   :  { %p1399_p1 = scmp.lt.u32.totalorder %s1395_s22, %s1610_s1 }
   0x6   :  { %p1401_p2 = pnand %p1399_p1, %p1396_p0 }
   0x8   :  { %1404 = shalt.err (!%p1401_p2)
}
   0x9   :  { %s1405_s27 = scalar_lea.vmem %s29_s19, 8192  ;;  %p1410_p4 = scmp.lt.s32.totalorder %s29_s19, %s29_s19 }
   0xa   :  { %p1406_p3 = scmp.ne.s32.totalorder %s29_s19, %s1405_s27  ;;  %p1411_p5 = scmp.lt.s32.totalorder %s1405_s27, %s1405_s27 }
   0xc   :  { %p1412_p6 = por %p1411_p5, %p1410_p4 }
   0xe   :  { %p1413_p7 = pnand %p1412_p6, %p1406_p3 }
  0x10   :  { %1416 = shalt.err (!%p1413_p7)
}
  0x11   :  { %s1490_s28 = smov 256   ;;  %s1491_s29 = smov 16  }
  0x12   :  { %34 = dma.hbm_to_vmem [thread:$0]  %s1610_s1, 8192, %s29_s19, [#allocation6], %s1490_s28, %s1490_s28, %s1491_s29  }
  0x13   :  { %s1492_s7 = smov [#allocation2]   ;;  %s1493_s9 = smov [#allocation7]  }
  0x14   :  { %s19_s8 = sshll.u32 %s1492_s7, 4  ;;  %s42_s10 = sshll.u32 %s1493_s9, 4  ;;  %s20_s8 = int_to_ptr.vmem [resolvable:$true] %s19_s8  ;;  %s43_s10 = int_to_ptr.vmem [resolvable:$true] %s42_s10 }
  0x15   :  { %s1417_s13 = scalar_lea.hbm %s1609_s0, 256 }
  0x16   :  { %p1418_p8 = scmp.ne.s32.totalorder %s1609_s0, %s1417_s13  ;;  %p1421_p9 = scmp.lt.u32.totalorder %s1417_s13, %s1609_s0 }
  0x18   :  { %p1423_p10 = pnand %p1421_p9, %p1418_p8 }
  0x1a   :  { %1426 = shalt.err (!%p1423_p10)
}
  0x1b   :  { %s1427_s1 = scalar_lea.vmem %s20_s8, 256  ;;  %p1432_p12 = scmp.lt.s32.totalorder %s20_s8, %s20_s8 }
  0x1c   :  { %p1428_p11 = scmp.ne.s32.totalorder %s20_s8, %s1427_s1  ;;  %p1433_p13 = scmp.lt.s32.totalorder %s1427_s1, %s1427_s1 }
  0x1e   :  { %p1434_p0 = por %p1433_p13, %p1432_p12 }
  0x20   :  { %p1435_p1 = pnand %p1434_p0, %p1428_p11 }
  0x22   :  { %1438 = shalt.err (!%p1435_p1)
}
  0x23   :  { %22 = dma.hbm_to_vmem [thread:$0]  %s1609_s0, 256, %s20_s8, [#allocation3]  }
  0x24   :  { %s1439_s22 = scalar_lea.hbm %s1612_s3, 8192 }
  0x25   :  { %p1440_p2 = scmp.ne.s32.totalorder %s1612_s3, %s1439_s22  ;;  %p1443_p3 = scmp.lt.u32.totalorder %s1439_s22, %s1612_s3 }
  0x27   :  { %p1445_p4 = pnand %p1443_p3, %p1440_p2 }
  0x29   :  { %1448 = shalt.err (!%p1445_p4)
}
  0x2a   :  { %s1449_s27 = scalar_lea.vmem %s43_s10, 8192  ;;  %p1454_p6 = scmp.lt.s32.totalorder %s43_s10, %s43_s10 }
  0x2b   :  { %p1450_p5 = scmp.ne.s32.totalorder %s43_s10, %s1449_s27  ;;  %p1455_p7 = scmp.lt.s32.totalorder %s1449_s27, %s1449_s27 }
  0x2d   :  { %p1456_p8 = por %p1455_p7, %p1454_p6 }
  0x2f   :  { %p1457_p9 = pnand %p1456_p8, %p1450_p5 }
  0x31   :  { %1460 = shalt.err (!%p1457_p9)
}
  0x32   :  { %s1494_s0 = smov 128   ;;  %s1495_s28 = smov 8  }
  0x33   :  { %48 = dma.hbm_to_vmem [thread:$0]  %s1612_s3, 8192, %s43_s10, [#allocation6], %s1494_s0, %s1494_s0, %s1495_s28  }
  0x34   :  { %1483 = dma.done.wait [#allocation3], 256  }
  0x35   :  { %1484 = vsyncadd [#allocation3], 4294967040 }
  0x36   :  { %1485 = dma.done.wait [#allocation6], 16384  }
  0x37   :  { %1486 = vsyncadd [#allocation6], 4294950912  ;;  %v1203_v0 = vld [vmem:[#allocation5 + $0x4] ss:$16 sps:$4 sm:$0xff]   ;;  %v1205_v1 = vld [vmem:[#allocation5] ss:$16 sps:$4 sm:$0xff]  }
  0x38   :  { %471 = vmatprep.subr.bf16.mxu1 %v1203_v0  ;;  %v1206_v2 = vld [vmem:[#allocation5 + $0x24] ss:$16 sps:$4 sm:$0xff]   ;;  %v1208_v3 = vld [vmem:[#allocation5 + $0x20] ss:$16 sps:$4 sm:$0xff]   ;;  %v62_v13 = vld [vmem:[#allocation2 + $0x8] sm:$0xff]  ;;  %s1496_s8 = smov [#allocation8]  }
  0x39   :  { %472 = vmatpush1.bf16.msra.mxu1 %v1205_v1  ;;  %v1209_v4 = vld [vmem:[#allocation5 + $0x44] ss:$16 sps:$4 sm:$0xff]   ;;  %v1211_v5 = vld [vmem:[#allocation5 + $0x40] ss:$16 sps:$4 sm:$0xff]   ;;  %v1563_v14 = vpack.c.bf16 %v62_v13, %v62_v13  ;;  %v1253_v45 = vld [vmem:[#allocation5 + $0xc] ss:$16 sps:$4 sm:$0xff]  }
  0x3a   :  { %473 = vmatprep.subr.bf16.mxu1 %v1206_v2  ;;  %v1212_v6 = vld [vmem:[#allocation5 + $0x64] ss:$16 sps:$4 sm:$0xff]   ;;  %v1214_v7 = vld [vmem:[#allocation5 + $0x60] ss:$16 sps:$4 sm:$0xff]   ;;  %v1251_v47 = vld [vmem:[#allocation5 + $0x8] ss:$16 sps:$4 sm:$0xff]  }
  0x3b   :  { %v1215_v8 = vld [vmem:[#allocation5 + $0x84] ss:$16 sps:$4 sm:$0xff]   ;;  %v1217_v9 = vld [vmem:[#allocation5 + $0x80] ss:$16 sps:$4 sm:$0xff]   ;;  %503 = vmatprep.mubr.bf16.mxu1 %v1563_v14  ;;  %v1256_v49 = vld [vmem:[#allocation5 + $0x2c] ss:$16 sps:$4 sm:$0xff]  }
  0x3c   :  { %v1218_v10 = vld [vmem:[#allocation5 + $0xa4] ss:$16 sps:$4 sm:$0xff]   ;;  %v1220_v11 = vld [vmem:[#allocation5 + $0xa0] ss:$16 sps:$4 sm:$0xff]   ;;  %v1254_v52 = vld [vmem:[#allocation5 + $0x28] ss:$16 sps:$4 sm:$0xff]  }
  0x3d   :  { %474 = vmatpush1.bf16.msra.mxu1 %v1208_v3  ;;  %v1221_v12 = vld [vmem:[#allocation5 + $0xc4] ss:$16 sps:$4 sm:$0xff]   ;;  %v1223_v15 = vld [vmem:[#allocation5 + $0xc0] ss:$16 sps:$4 sm:$0xff]   ;;  %v1259_v53 = vld [vmem:[#allocation5 + $0x4c] ss:$16 sps:$4 sm:$0xff]  }
  0x3e   :  { %475 = vmatprep.subr.bf16.mxu1 %v1209_v4  ;;  %v1224_v16 = vld [vmem:[#allocation5 + $0xe4] ss:$16 sps:$4 sm:$0xff]   ;;  %v1226_v17 = vld [vmem:[#allocation5 + $0xe0] ss:$16 sps:$4 sm:$0xff]   ;;  %v1257_v56 = vld [vmem:[#allocation5 + $0x48] ss:$16 sps:$4 sm:$0xff]  }
  0x3f   :  { %v1227_v18 = vld [vmem:[#allocation5 + $0x104] ss:$16 sps:$4 sm:$0xff]   ;;  %v1229_v19 = vld [vmem:[#allocation5 + $0x100] ss:$16 sps:$4 sm:$0xff]   ;;  %v1262_v57 = vld [vmem:[#allocation5 + $0x6c] ss:$16 sps:$4 sm:$0xff]  }
  0x40   :  { %v1230_v20 = vld [vmem:[#allocation5 + $0x124] ss:$16 sps:$4 sm:$0xff]   ;;  %v1232_v21 = vld [vmem:[#allocation5 + $0x120] ss:$16 sps:$4 sm:$0xff]   ;;  %v1260_v60 = vld [vmem:[#allocation5 + $0x68] ss:$16 sps:$4 sm:$0xff]  }
  0x41   :  { %476 = vmatpush1.bf16.msra.mxu1 %v1211_v5  ;;  %v1233_v22 = vld [vmem:[#allocation5 + $0x144] ss:$16 sps:$4 sm:$0xff]   ;;  %v1235_v23 = vld [vmem:[#allocation5 + $0x140] ss:$16 sps:$4 sm:$0xff]   ;;  %v1265_v61 = vld [vmem:[#allocation5 + $0x8c] ss:$16 sps:$4 sm:$0xff]  }
  0x42   :  { %477 = vmatprep.subr.bf16.mxu1 %v1212_v6  ;;  %v1236_v24 = vld [vmem:[#allocation5 + $0x164] ss:$16 sps:$4 sm:$0xff]   ;;  %v1238_v25 = vld [vmem:[#allocation5 + $0x160] ss:$16 sps:$4 sm:$0xff]   ;;  %v1263_v0 = vld [vmem:[#allocation5 + $0x88] ss:$16 sps:$4 sm:$0xff]  }
  0x43   :  { %v1239_v26 = vld [vmem:[#allocation5 + $0x184] ss:$16 sps:$4 sm:$0xff]   ;;  %v1301_v28 = vld [vmem:[#allocation7] ss:$8 sps:$4 sm:$0xff]   ;;  %v1304_v31 = vld [vmem:[#allocation7 + $0x10] ss:$8 sps:$4 sm:$0xff]  }
  0x44   :  { %v1299_v27 = vld [vmem:[#allocation7 + $0x4] ss:$8 sps:$4 sm:$0xff]   ;;  %v1302_v29 = vld [vmem:[#allocation7 + $0x14] ss:$8 sps:$4 sm:$0xff]   ;;  %v1241_v30 = vld [vmem:[#allocation5 + $0x180] ss:$16 sps:$4 sm:$0xff]  }
  0x45   :  { %478 = vmatpush1.bf16.msra.mxu1 %v1214_v7  ;;  %961 = vmatprep.subr.bf16.mxu0 %v1299_v27  ;;  %v1242_v32 = vld [vmem:[#allocation5 + $0x1a4] ss:$16 sps:$4 sm:$0xff]   ;;  %v1244_v34 = vld [vmem:[#allocation5 + $0x1a0] ss:$16 sps:$4 sm:$0xff]   ;;  %v1268_v1 = vld [vmem:[#allocation5 + $0xac] ss:$16 sps:$4 sm:$0xff]  }
  0x46   :  { %479 = vmatprep.subr.bf16.mxu1 %v1215_v8  ;;  %962 = vmatpush1.bf16.msra.mxu0 %v1301_v28  ;;  %v1305_v33 = vld [vmem:[#allocation7 + $0x24] ss:$8 sps:$4 sm:$0xff]   ;;  %v1307_v35 = vld [vmem:[#allocation7 + $0x20] ss:$8 sps:$4 sm:$0xff]   ;;  %v1308_v37 = vld [vmem:[#allocation7 + $0x34] ss:$8 sps:$4 sm:$0xff]  }
  0x47   :  { %963 = vmatprep.subr.bf16.mxu0 %v1302_v29  ;;  %v1245_v36 = vld [vmem:[#allocation5 + $0x1c4] ss:$16 sps:$4 sm:$0xff]   ;;  %v1247_v38 = vld [vmem:[#allocation5 + $0x1c0] ss:$16 sps:$4 sm:$0xff]   ;;  %v1266_v4 = vld [vmem:[#allocation5 + $0xa8] ss:$16 sps:$4 sm:$0xff]  }
  0x48   :  { %v1310_v39 = vld [vmem:[#allocation7 + $0x30] ss:$8 sps:$4 sm:$0xff]   ;;  %v1248_v40 = vld [vmem:[#allocation5 + $0x1e4] ss:$16 sps:$4 sm:$0xff]   ;;  %v1313_v44 = vld [vmem:[#allocation7 + $0x40] ss:$8 sps:$4 sm:$0xff]  }
  0x49   :  { %480 = vmatpush1.bf16.msra.mxu1 %v1217_v9  ;;  %v1311_v41 = vld [vmem:[#allocation7 + $0x44] ss:$8 sps:$4 sm:$0xff]   ;;  %v1250_v42 = vld [vmem:[#allocation5 + $0x1e0] ss:$16 sps:$4 sm:$0xff]   ;;  %v1314_v46 = vld [vmem:[#allocation7 + $0x54] ss:$8 sps:$4 sm:$0xff]  }
  0x4a   :  { %481 = vmatprep.subr.bf16.mxu1 %v1218_v10  ;;  %964 = vmatpush1.bf16.msra.mxu0 %v1304_v31  ;;  %v61_v43 = vld [vmem:[#allocation2] sm:$0xff]  ;;  %v1317_v51 = vld [vmem:[#allocation7 + $0x64] ss:$8 sps:$4 sm:$0xff]   ;;  %v1319_v54 = vld [vmem:[#allocation7 + $0x60] ss:$8 sps:$4 sm:$0xff]   ;;  %s1051_s9 = sshll.u32 %s1496_s8, 4  ;;  %s1052_s9 = int_to_ptr.vmem [resolvable:$true] %s1051_s9 }
  0x4b   :  { %965 = vmatprep.subr.bf16.mxu0 %v1305_v33  ;;  %v1566_v48 = vpack.c.bf16 %v61_v43, %v61_v43  ;;  %v1316_v50 = vld [vmem:[#allocation7 + $0x50] ss:$8 sps:$4 sm:$0xff]   ;;  %v1320_v55 = vld [vmem:[#allocation7 + $0x74] ss:$8 sps:$4 sm:$0xff]   ;;  %v1323_v59 = vld [vmem:[#allocation7 + $0x84] ss:$8 sps:$4 sm:$0xff]   ;;  %p1466_p11 = scmp.lt.s32.totalorder %s1052_s9, %s1052_s9 }
  0x4c   :  { %v1322_v58 = vld [vmem:[#allocation7 + $0x70] ss:$8 sps:$4 sm:$0xff]   ;;  %v1325_v62 = vld [vmem:[#allocation7 + $0x80] ss:$8 sps:$4 sm:$0xff]   ;;  %v1326_v63 = vld [vmem:[#allocation7 + $0x94] ss:$8 sps:$4 sm:$0xff]  }
  0x4d   :  { %482 = vmatpush1.bf16.msra.mxu1 %v1220_v11  ;;  %v1328_v2 = vld [vmem:[#allocation7 + $0x90] ss:$8 sps:$4 sm:$0xff]   ;;  %v1329_v3 = vld [vmem:[#allocation7 + $0xa4] ss:$8 sps:$4 sm:$0xff]   ;;  %v1331_v6 = vld [vmem:[#allocation7 + $0xa0] ss:$8 sps:$4 sm:$0xff]  }
  0x4e   :  { %483 = vmatprep.subr.bf16.mxu1 %v1221_v12  ;;  %966 = vmatpush1.bf16.msra.mxu0 %v1307_v35  ;;  %v1271_v5 = vld [vmem:[#allocation5 + $0xcc] ss:$16 sps:$4 sm:$0xff]   ;;  %v1269_v8 = vld [vmem:[#allocation5 + $0xc8] ss:$16 sps:$4 sm:$0xff]   ;;  %s1461_s10 = scalar_lea.vmem %s1052_s9, 256 }
  0x4f   :  { %967 = vmatprep.subr.bf16.mxu0 %v1308_v37  ;;  %v1332_v7 = vld [vmem:[#allocation7 + $0xb4] ss:$8 sps:$4 sm:$0xff]   ;;  %v1334_v10 = vld [vmem:[#allocation7 + $0xb0] ss:$8 sps:$4 sm:$0xff]   ;;  %v1335_v11 = vld [vmem:[#allocation7 + $0xc4] ss:$8 sps:$4 sm:$0xff]   ;;  %v131_v37 = vlaneseq  ;;  %p1462_p10 = scmp.ne.s32.totalorder %s1052_s9, %s1461_s10  ;;  %p1467_p12 = scmp.lt.s32.totalorder %s1461_s10, %s1461_s10 }
  0x50   :  { %v1274_v9 = vld [vmem:[#allocation5 + $0xec] ss:$16 sps:$4 sm:$0xff]   ;;  %v1272_v12 = vld [vmem:[#allocation5 + $0xe8] ss:$16 sps:$4 sm:$0xff]  }
  0x51   :  { %484 = vmatpush1.bf16.msra.mxu1 %v1223_v15  ;;  %v1277_v13 = vld [vmem:[#allocation5 + $0x10c] ss:$16 sps:$4 sm:$0xff]   ;;  %v1293_v28 = vld [vmem:[#allocation5 + $0x1c8] ss:$16 sps:$4 sm:$0xff]   ;;  %p1468_p13 = por %p1467_p12, %p1466_p11 }
  0x52   :  { %485 = vmatprep.subr.bf16.mxu1 %v1224_v16  ;;  %968 = vmatpush1.bf16.msra.mxu0 %v1310_v39  ;;  %v1338_v15 = vld [vmem:[#allocation7 + $0xd4] ss:$8 sps:$4 sm:$0xff]   ;;  %v1275_v16 = vld [vmem:[#allocation5 + $0x108] ss:$16 sps:$4 sm:$0xff]  }
  0x53   :  { %969 = vmatprep.subr.bf16.mxu0 %v1311_v41  ;;  %v1295_v27 = vld [vmem:[#allocation5 + $0x1cc] ss:$16 sps:$4 sm:$0xff]   ;;  %v1340_v31 = vld [vmem:[#allocation7 + $0xd0] ss:$8 sps:$4 sm:$0xff]   ;;  %v1343_v33 = vld [vmem:[#allocation7 + $0xe0] ss:$8 sps:$4 sm:$0xff]   ;;  %p1469_p0 = pnand %p1468_p13, %p1462_p10 }
  0x54   :  { %v1298_v29 = vld [vmem:[#allocation5 + $0x1ec] ss:$16 sps:$4 sm:$0xff]   ;;  %v1346_v35 = vld [vmem:[#allocation7 + $0xf0] ss:$8 sps:$4 sm:$0xff]  }
  0x55   :  { %486 = vmatpush1.bf16.msra.mxu1 %v1226_v17  ;;  %v1280_v17 = vld [vmem:[#allocation5 + $0x12c] ss:$16 sps:$4 sm:$0xff]  }
  0x56   :  { %487 = vmatprep.subr.bf16.mxu1 %v1227_v18  ;;  %970 = vmatpush1.bf16.msra.mxu0 %v1313_v44  ;;  %v1278_v18 = vld [vmem:[#allocation5 + $0x128] ss:$16 sps:$4 sm:$0xff]  }
  0x57   :  { %971 = vmatprep.subr.bf16.mxu0 %v1314_v46 }
  0x59   :  { %488 = vmatpush1.bf16.msra.mxu1 %v1229_v19  ;;  %v1283_v19 = vld [vmem:[#allocation5 + $0x14c] ss:$16 sps:$4 sm:$0xff]  }
  0x5a   :  { %489 = vmatprep.subr.bf16.mxu1 %v1230_v20  ;;  %972 = vmatpush1.bf16.msra.mxu0 %v1316_v50  ;;  %v1281_v20 = vld [vmem:[#allocation5 + $0x148] ss:$16 sps:$4 sm:$0xff]  }
  0x5b   :  { %973 = vmatprep.subr.bf16.mxu0 %v1317_v51 }
  0x5d   :  { %490 = vmatpush1.bf16.msra.mxu1 %v1232_v21  ;;  %v1286_v21 = vld [vmem:[#allocation5 + $0x16c] ss:$16 sps:$4 sm:$0xff]  }
  0x5e   :  { %491 = vmatprep.subr.bf16.mxu1 %v1233_v22  ;;  %974 = vmatpush1.bf16.msra.mxu0 %v1319_v54  ;;  %v1284_v22 = vld [vmem:[#allocation5 + $0x168] ss:$16 sps:$4 sm:$0xff]  }
  0x5f   :  { %975 = vmatprep.subr.bf16.mxu0 %v1320_v55  ;;  %v1347_v55 = vld [vmem:[#allocation7 + $0x100] ss:$8 sps:$4 sm:$0xff]  }
  0x61   :  { %492 = vmatpush1.bf16.msra.mxu1 %v1235_v23  ;;  %v1289_v23 = vld [vmem:[#allocation5 + $0x18c] ss:$16 sps:$4 sm:$0xff]  }
  0x62   :  { %493 = vmatprep.subr.bf16.mxu1 %v1236_v24  ;;  %976 = vmatpush1.bf16.msra.mxu0 %v1322_v58  ;;  %v1287_v24 = vld [vmem:[#allocation5 + $0x188] ss:$16 sps:$4 sm:$0xff]  }
  0x63   :  { %977 = vmatprep.subr.bf16.mxu0 %v1323_v59  ;;  %v1350_v58 = vld [vmem:[#allocation7 + $0x110] ss:$8 sps:$4 sm:$0xff]   ;;  %v1355_v59 = vld [vmem:[#allocation7 + $0x124] ss:$8 sps:$4 sm:$0xff]  }
  0x65   :  { %494 = vmatpush1.bf16.msra.mxu1 %v1238_v25  ;;  %v1292_v25 = vld [vmem:[#allocation5 + $0x1ac] ss:$16 sps:$4 sm:$0xff]  }
  0x66   :  { %495 = vmatprep.subr.bf16.mxu1 %v1239_v26  ;;  %978 = vmatpush1.bf16.msra.mxu0 %v1325_v62  ;;  %v1290_v26 = vld [vmem:[#allocation5 + $0x1a8] ss:$16 sps:$4 sm:$0xff]  }
  0x67   :  { %979 = vmatprep.subr.bf16.mxu0 %v1326_v63  ;;  %v1356_v62 = vld [vmem:[#allocation7 + $0x130] ss:$8 sps:$4 sm:$0xff]   ;;  %v1361_v63 = vld [vmem:[#allocation7 + $0x144] ss:$8 sps:$4 sm:$0xff]  }
  0x69   :  { %496 = vmatpush1.bf16.msra.mxu1 %v1241_v30  ;;  %v1296_v30 = vld [vmem:[#allocation5 + $0x1e8] ss:$16 sps:$4 sm:$0xff]  }
  0x6a   :  { %497 = vmatprep.subr.bf16.mxu1 %v1242_v32  ;;  %980 = vmatpush1.bf16.msra.mxu0 %v1328_v2  ;;  %v1341_v32 = vld [vmem:[#allocation7 + $0xe4] ss:$8 sps:$4 sm:$0xff]   ;;  %v1362_v2 = vld [vmem:[#allocation7 + $0x150] ss:$8 sps:$4 sm:$0xff]  }
  0x6b   :  { %981 = vmatprep.subr.bf16.mxu0 %v1329_v3  ;;  %v1367_v3 = vld [vmem:[#allocation7 + $0x164] ss:$8 sps:$4 sm:$0xff]  }
  0x6d   :  { %498 = vmatpush1.bf16.msra.mxu1 %v1244_v34  ;;  %v1344_v34 = vld [vmem:[#allocation7 + $0xf4] ss:$8 sps:$4 sm:$0xff]  }
  0x6e   :  { %499 = vmatprep.subr.bf16.mxu1 %v1245_v36  ;;  %982 = vmatpush1.bf16.msra.mxu0 %v1331_v6  ;;  %v1349_v36 = vld [vmem:[#allocation7 + $0x104] ss:$8 sps:$4 sm:$0xff]   ;;  %v1368_v6 = vld [vmem:[#allocation7 + $0x170] ss:$8 sps:$4 sm:$0xff]  }
  0x6f   :  { %983 = vmatprep.subr.bf16.mxu0 %v1332_v7  ;;  %v1373_v7 = vld [vmem:[#allocation7 + $0x184] ss:$8 sps:$4 sm:$0xff]  }
  0x71   :  { %500 = vmatpush1.bf16.msra.mxu1 %v1247_v38  ;;  %v1571_v38 = vshrl.u32 %v131_v37, 7 }
  0x72   :  { %501 = vmatprep.subr.bf16.mxu1 %v1248_v40  ;;  %984 = vmatpush1.bf16.msra.mxu0 %v1334_v10  ;;  %v1577_v40 = vld [vmem:[%s1611_s2] sm:$0xf] }
  0x73   :  { %985 = vmatprep.subr.bf16.mxu0 %v1335_v11  ;;  %v133_v39 = vsub.s32 0, %v1571_v38  ;;  %v137_v41 = vsub.s32 1, %v1571_v38  ;;  %v1374_v10 = vld [vmem:[#allocation7 + $0x190] ss:$8 sps:$4 sm:$0xff]   ;;  %v1379_v11 = vld [vmem:[#allocation7 + $0x1a4] ss:$8 sps:$4 sm:$0xff]  }
  0x75   :  { %502 = vmatpush1.bf16.msra.mxu1 %v1250_v42  ;;  %v134_v42 = vrot.slane %v1577_v40, %v133_v39  ;;  %v138_v43 = vrot.slane %v1577_v40, %v137_v41 }
  0x76   :  { %512 = vmatprep.subr.bf16.mxu1 %v1253_v45 }
  0x78   :  { %504 = vmatmul.mubr.bf16.vlgmr.msra.gmra.mrb[0].mxu1 %v1566_v48 }
  0x79   :  { %513 = vmatpush1.bf16.msra.mxu1 %v1251_v47  ;;  %544 = vmatprep.mubr.bf16.mxu1 %v1563_v14  ;;  %v1337_v14 = vld [vmem:[#allocation7 + $0xc0] ss:$8 sps:$4 sm:$0xff]  }
  0x7a   :  { %514 = vmatprep.subr.bf16.mxu1 %v1256_v49  ;;  %986 = vmatpush1.bf16.msra.mxu0 %v1337_v14  ;;  %v1380_v14 = vld [vmem:[#allocation7 + $0x1b0] ss:$8 sps:$4 sm:$0xff]  }
  0x7b   :  { %987 = vmatprep.subr.bf16.mxu0 %v1338_v15  ;;  %v1385_v15 = vld [vmem:[#allocation7 + $0x1c4] ss:$8 sps:$4 sm:$0xff]  }
  0x7d   :  { %515 = vmatpush1.bf16.msra.mxu1 %v1254_v52 }
  0x7e   :  { %516 = vmatprep.subr.bf16.mxu1 %v1259_v53  ;;  %988 = vmatpush1.bf16.msra.mxu0 %v1340_v31 }
  0x7f   :  { %989 = vmatprep.subr.bf16.mxu0 %v1341_v32 }
  0x81   :  { %517 = vmatpush1.bf16.msra.mxu1 %v1257_v56 }
  0x82   :  { %518 = vmatprep.subr.bf16.mxu1 %v1262_v57  ;;  %990 = vmatpush1.bf16.msra.mxu0 %v1343_v33  ;;  %v1352_v57 = vld [vmem:[#allocation7 + $0x114] ss:$8 sps:$4 sm:$0xff]  }
  0x83   :  { %991 = vmatprep.subr.bf16.mxu0 %v1344_v34  ;;  %v1392_v34 = vld [vmem:[#allocation7 + $0x1f0] ss:$8 sps:$4 sm:$0xff]  }
  0x85   :  { %519 = vmatpush1.bf16.msra.mxu1 %v1260_v60  ;;  %v1353_v60 = vld [vmem:[#allocation7 + $0x120] ss:$8 sps:$4 sm:$0xff]  }
  0x86   :  { %520 = vmatprep.subr.bf16.mxu1 %v1265_v61  ;;  %992 = vmatpush1.bf16.msra.mxu0 %v1346_v35  ;;  %v1358_v61 = vld [vmem:[#allocation7 + $0x134] ss:$8 sps:$4 sm:$0xff]  }
  0x87   :  { %1002 = vmatprep.subr.bf16.mxu0 %v1349_v36 }
  0x89   :  { %521 = vmatpush1.bf16.msra.mxu1 %v1263_v0  ;;  %v1359_v0 = vld [vmem:[#allocation7 + $0x140] ss:$8 sps:$4 sm:$0xff]  }
  0x8a   :  { %522 = vmatprep.subr.bf16.mxu1 %v1268_v1  ;;  %v1364_v1 = vld [vmem:[#allocation7 + $0x154] ss:$8 sps:$4 sm:$0xff]  }
  0x8d   :  { %523 = vmatpush1.bf16.msra.mxu1 %v1266_v4  ;;  %v1365_v4 = vld [vmem:[#allocation7 + $0x160] ss:$8 sps:$4 sm:$0xff]  }
  0x8e   :  { %524 = vmatprep.subr.bf16.mxu1 %v1271_v5  ;;  %v1370_v5 = vld [vmem:[#allocation7 + $0x174] ss:$8 sps:$4 sm:$0xff]  }
  0x91   :  { %525 = vmatpush1.bf16.msra.mxu1 %v1269_v8  ;;  %v1371_v8 = vld [vmem:[#allocation7 + $0x180] ss:$8 sps:$4 sm:$0xff]  }
  0x92   :  { %526 = vmatprep.subr.bf16.mxu1 %v1274_v9  ;;  %v1376_v9 = vld [vmem:[#allocation7 + $0x194] ss:$8 sps:$4 sm:$0xff]  }
  0x95   :  { %527 = vmatpush1.bf16.msra.mxu1 %v1272_v12  ;;  %v1377_v12 = vld [vmem:[#allocation7 + $0x1a0] ss:$8 sps:$4 sm:$0xff]  }
  0x96   :  { %528 = vmatprep.subr.bf16.mxu1 %v1277_v13  ;;  %v1382_v13 = vld [vmem:[#allocation7 + $0x1b4] ss:$8 sps:$4 sm:$0xff]  }
  0x99   :  { %529 = vmatpush1.bf16.msra.mxu1 %v1275_v16  ;;  %v1383_v16 = vld [vmem:[#allocation7 + $0x1c0] ss:$8 sps:$4 sm:$0xff]  }
  0x9a   :  { %530 = vmatprep.subr.bf16.mxu1 %v1280_v17  ;;  %v1388_v17 = vld [vmem:[#allocation7 + $0x1d4] ss:$8 sps:$4 sm:$0xff]  }
  0x9d   :  { %531 = vmatpush1.bf16.msra.mxu1 %v1278_v18  ;;  %v141_v18 = vsub.s32 2, %v1571_v38 }
  0x9e   :  { %532 = vmatprep.subr.bf16.mxu1 %v1283_v19  ;;  %v145_v19 = vsub.s32 3, %v1571_v38 }
  0xa1   :  { %533 = vmatpush1.bf16.msra.mxu1 %v1281_v20  ;;  %v1386_v20 = vld [vmem:[#allocation7 + $0x1d0] ss:$8 sps:$4 sm:$0xff]  }
  0xa2   :  { %534 = vmatprep.subr.bf16.mxu1 %v1286_v21  ;;  %v142_v21 = vrot.slane %v1577_v40, %v141_v18 }
  0xa5   :  { %535 = vmatpush1.bf16.msra.mxu1 %v1284_v22  ;;  %v1391_v22 = vld [vmem:[#allocation7 + $0x1e4] ss:$8 sps:$4 sm:$0xff]  }
  0xa6   :  { %536 = vmatprep.subr.bf16.mxu1 %v1289_v23  ;;  %v146_v23 = vrot.slane %v1577_v40, %v145_v19 }
  0xa9   :  { %537 = vmatpush1.bf16.msra.mxu1 %v1287_v24 }
  0xaa   :  { %538 = vmatprep.subr.bf16.mxu1 %v1292_v25  ;;  %v1389_v25 = vld [vmem:[#allocation7 + $0x1e0] ss:$8 sps:$4 sm:$0xff]  }
  0xad   :  { %539 = vmatpush1.bf16.msra.mxu1 %v1290_v26 }
  0xae   :  { %540 = vmatprep.subr.bf16.mxu1 %v1295_v27 }
  0xb1   :  { %541 = vmatpush1.bf16.msra.mxu1 %v1293_v28  ;;  %v1394_v28 = vld [vmem:[#allocation7 + $0x1f4] ss:$8 sps:$4 sm:$0xff]  }
  0xb2   :  { %542 = vmatprep.subr.bf16.mxu1 %v1298_v29 }
  0xb5   :  { %543 = vmatpush1.bf16.msra.mxu1 %v1296_v30 }
  0xb8   :  { %545 = vmatmul.mubr.bf16.vlgmr.msra.gmra.mrb[4].mxu1 %v1566_v48 }
 0x14b   :  { %v505_v44 = vpop.f32.mrb[0].mxu1 }
 0x14c   :  { %v506_v45 = vadd.f32 %v505_v44, %v134_v42  ;;  %v507_v46 = vpop.f32.mrb[1].mxu1  ;;  %v629_v42 = vld [vmem:[%s1613_s4] sm:$0x3] }
 0x14d   :  { %v508_v47 = vadd.f32 %v507_v46, %v138_v43  ;;  %v509_v48 = vpop.f32.mrb[2].mxu1  ;;  %v634_v43 = vrot.slane %v629_v42, %v133_v39  ;;  %v638_v44 = vrot.slane %v629_v42, %v137_v41 }
 0x14e   :  { %v553_v49 = vpack.c.bf16 %v506_v45, %v506_v45  ;;  %v510_v50 = vpop.f32.mrb[3].mxu1 }
 0x14f   :  { %v554_v51 = vpack.c.bf16 %v508_v47, %v508_v47 }
 0x150   :  { %v557_v52 = vmul.bf16 1009007652, %v553_v49 }
 0x151   :  { %v558_v53 = vmul.bf16 1009007652, %v554_v51 }
 0x152   :  { %v561_v56 = vmax.bf16 %v557_v52, %v553_v49 }
 0x153   :  { %v562_v54 = vmax.bf16 %v558_v53, %v554_v51 }
 0x155   :  { %993 = vmatprep.mubr.bf16.mxu0 %v562_v54 }
 0x156   :  { %994 = vmatmul.mubr.bf16.vlgmr.msra.gmra.mrb[0].mxu0 %v561_v56 }
 0x157   :  { %1003 = vmatpush1.bf16.msra.mxu0 %v1347_v55 }
 0x158   :  { %1004 = vmatprep.subr.bf16.mxu0 %v1352_v57 }
 0x15b   :  { %1005 = vmatpush1.bf16.msra.mxu0 %v1350_v58 }
 0x15c   :  { %1006 = vmatprep.subr.bf16.mxu0 %v1355_v59 }
 0x15f   :  { %1007 = vmatpush1.bf16.msra.mxu0 %v1353_v60 }
 0x160   :  { %1008 = vmatprep.subr.bf16.mxu0 %v1358_v61 }
 0x163   :  { %1009 = vmatpush1.bf16.msra.mxu0 %v1356_v62 }
 0x164   :  { %1010 = vmatprep.subr.bf16.mxu0 %v1361_v63 }
 0x167   :  { %1011 = vmatpush1.bf16.msra.mxu0 %v1359_v0 }
 0x168   :  { %1012 = vmatprep.subr.bf16.mxu0 %v1364_v1 }
 0x16b   :  { %1013 = vmatpush1.bf16.msra.mxu0 %v1362_v2 }
 0x16c   :  { %1014 = vmatprep.subr.bf16.mxu0 %v1367_v3 }
 0x16f   :  { %1015 = vmatpush1.bf16.msra.mxu0 %v1365_v4 }
 0x170   :  { %1016 = vmatprep.subr.bf16.mxu0 %v1370_v5 }
 0x173   :  { %1017 = vmatpush1.bf16.msra.mxu0 %v1368_v6 }
 0x174   :  { %1018 = vmatprep.subr.bf16.mxu0 %v1373_v7 }
 0x177   :  { %1019 = vmatpush1.bf16.msra.mxu0 %v1371_v8 }
 0x178   :  { %1020 = vmatprep.subr.bf16.mxu0 %v1376_v9 }
 0x17b   :  { %1021 = vmatpush1.bf16.msra.mxu0 %v1374_v10 }
 0x17c   :  { %1022 = vmatprep.subr.bf16.mxu0 %v1379_v11 }
 0x17f   :  { %1023 = vmatpush1.bf16.msra.mxu0 %v1377_v12 }
 0x180   :  { %1024 = vmatprep.subr.bf16.mxu0 %v1382_v13 }
 0x183   :  { %1025 = vmatpush1.bf16.msra.mxu0 %v1380_v14 }
 0x184   :  { %1026 = vmatprep.subr.bf16.mxu0 %v1385_v15 }
 0x187   :  { %1027 = vmatpush1.bf16.msra.mxu0 %v1383_v16 }
 0x188   :  { %1028 = vmatprep.subr.bf16.mxu0 %v1388_v17 }
 0x18b   :  { %v546_v24 = vpop.f32.mrb[4].mxu1  ;;  %1029 = vmatpush1.bf16.msra.mxu0 %v1386_v20 }
 0x18c   :  { %v547_v26 = vadd.f32 %v546_v24, %v142_v21  ;;  %v548_v27 = vpop.f32.mrb[5].mxu1  ;;  %1030 = vmatprep.subr.bf16.mxu0 %v1391_v22 }
 0x18d   :  { %v549_v29 = vadd.f32 %v548_v27, %v146_v23  ;;  %v550_v30 = vpop.f32.mrb[6].mxu1 }
 0x18e   :  { %v555_v31 = vpack.c.bf16 %v547_v26, %v547_v26  ;;  %v551_v32 = vpop.f32.mrb[7].mxu1 }
 0x18f   :  { %v556_v33 = vpack.c.bf16 %v549_v29, %v549_v29  ;;  %1031 = vmatpush1.bf16.msra.mxu0 %v1389_v25 }
 0x190   :  { %v559_v35 = vmul.bf16 1009007652, %v555_v31  ;;  %1032 = vmatprep.subr.bf16.mxu0 %v1394_v28 }
 0x191   :  { %v560_v36 = vmul.bf16 1009007652, %v556_v33 }
 0x192   :  { %v563_v40 = vmax.bf16 %v559_v35, %v555_v31 }
 0x193   :  { %v564_v37 = vmax.bf16 %v560_v36, %v556_v33  ;;  %1033 = vmatpush1.bf16.msra.mxu0 %v1392_v34 }
 0x195   :  { %1034 = vmatprep.mubr.bf16.mxu0 %v564_v37 }
 0x196   :  { %1035 = vmatmul.mubr.bf16.vlgmr.msra.gmra.mrb[0].mxu0 %v563_v40 }
 0x269   :  { %v1036_v45 = vpop.f32.mrb[0].mxu0 }
 0x26a   :  { %v1189_v46 = vadd.f32 %v1036_v45, %v634_v43  ;;  %v1038_v47 = vpop.f32.mrb[1].mxu0 }
 0x26b   :  { %v1190_v48 = vadd.f32 %v1038_v47, %v638_v44  ;;  %v1040_v49 = vpop.f32.mrb[2].mxu0 }
 0x26c   :  { %1043 = vst [vmem:[#allocation8] sm:$0xff] %v1189_v46  ;;  %v1041_v50 = vpop.f32.mrb[3].mxu0 }
 0x26d   :  { %1044 = vst [vmem:[#allocation8 + $0x8] sm:$0xff] %v1190_v48 }
 0x26e   :  { %1472 = shalt.err (!%p1469_p0)
}
 0x26f   :  { %s1473_s12 = scalar_lea.hbm %s1614_s5, 256 }
 0x270   :  { %p1474_p1 = scmp.ne.s32.totalorder %s1614_s5, %s1473_s12  ;;  %p1477_p2 = scmp.lt.u32.totalorder %s1473_s12, %s1614_s5 }
 0x272   :  { %p1479_p3 = pnand %p1477_p2, %p1474_p1 }
 0x274   :  { %1482 = shalt.err (!%p1479_p3)
}
 0x275   :  { %1054 = dma.vmem_to_hbm [thread:$0]  %s1052_s9, 256, %s1614_s5, [#allocation4]  }
 0x276   :  { %1487 = dma.done.wait [#allocation4], 256  }
 0x277   :  { %1488 = vsyncadd [#allocation4], 4294967040 }
 0x278   :  { %1058 = vsyncpa [#allocation3], 1 }
 0x279   :  { %1059 = vsyncpa [#allocation6], 1 }
 0x27a   :  { %1060 = vsyncpa [#allocation4], 1 }

</bundles_post_ra>
